<compile_context>
chip_gen: v7x
topology: tpu7x:2x2x1
jax: 0.10.0
libtpu: 0.0.40
codegen_flags: <defaults>
</compile_context>

<pallas_src>
import functools

import jax
import jax.numpy as jnp
import numpy as np
from jax.experimental import pallas as pl
from jax.experimental.pallas import tpu as pltpu

_VMEM_LIMIT = 32 * 1024 * 1024  # explicit, safe on v5e/v6e/v7x


# ------------------------------- fused kernel --------------------------------

def _upblock_fused_kernel(x_ref, s_ref, ax_ref, as_ref, upb_ref,
                          b1w_ref, b1b_ref, g1_ref, be1_ref,
                          b2w_ref, b2b_ref, g2_ref, be2_ref,
                          wu_ref, wr_ref, adjb_ref,
                          o_ref, pad_ref, *, channels):
    """Whole UpBlock forward for one sample (grid axis 0 = batch).

    x_ref/s_ref: (1, H, W*C) lane-fused inputs (no channel concat).
    ax_ref/as_ref: (2, W*C, 2W*C) per-kh ConvTranspose expansion matrices.
    b1w_ref/b2w_ref: (3, 2W*C, 2W*C) per-kh banded 3x3 conv weights (kw and
        W zero-padding folded into the band structure).
    wu_ref/wr_ref: (2W*C, 2W*C) block-diagonal 1x1-conv weights (concat-free).
    o_ref: (1, 2H, 2W*C) lane-dense output.
    pad_ref: VMEM scratch (2H+2, 2W*C) for H zero-padding of the 3x3 convs.
    """
    Ho = o_ref.shape[1]        # 2H
    WoC = o_ref.shape[2]       # 2W*C

    # ---- 1) ConvTranspose2d(2C->C, k=2, s=2): split matmul + fused
    #         depth-to-space (rows written directly interleaved over kh).
    x2 = x_ref[0]
    s2 = s_ref[0]
    rows = []
    for kh in range(2):        # static unroll
        r = jnp.dot(x2, ax_ref[kh], preferred_element_type=jnp.float32)
        r = r + jnp.dot(s2, as_ref[kh], preferred_element_type=jnp.float32)
        rows.append(r + upb_ref[...])
    up = jnp.stack(rows, axis=1).reshape(Ho, WoC)      # (2H, 2W*C), in VMEM

    # ---- GroupNorm(2) constants (shared by both residual convs)
    eps = 1e-5
    gc = channels // 2
    Wo = WoC // channels
    cnt = float(Ho * Wo * gc)
    ch = jax.lax.broadcasted_iota(jnp.int32, (1, WoC), 1) % channels
    mask0 = ch < gc                                    # group 0; group 1 = ~mask0

    # Zero the two H-pad rows once; interior rows are overwritten per conv.
    pad_ref[0:1, :] = jnp.zeros((1, WoC), jnp.float32)
    pad_ref[Ho + 1:Ho + 2, :] = jnp.zeros((1, WoC), jnp.float32)

    def conv3x3_gn_silu(inp, bw_ref, bb_ref, g_ref, be_ref):
        # 3x3 conv == 3 shifted-row matmuls against banded weights.
        pad_ref[1:Ho + 1, :] = inp
        acc = jnp.dot(pad_ref[0:Ho, :], bw_ref[0],
                      preferred_element_type=jnp.float32)
        acc = acc + jnp.dot(pad_ref[1:Ho + 1, :], bw_ref[1],
                            preferred_element_type=jnp.float32)
        acc = acc + jnp.dot(pad_ref[2:Ho + 2, :], bw_ref[2],
                            preferred_element_type=jnp.float32)
        acc = acc + bb_ref[...]

        # GroupNorm(2): single-traversal sum + sum-of-squares per group.
        acc2 = acc * acc
        s_all = jnp.sum(acc)
        q_all = jnp.sum(acc2)
        s0 = jnp.sum(jnp.where(mask0, acc, 0.0))
        q0 = jnp.sum(jnp.where(mask0, acc2, 0.0))
        s1 = s_all - s0
        q1 = q_all - q0
        m0 = s0 / cnt
        m1 = s1 / cnt
        r0 = jax.lax.rsqrt(q0 / cnt - m0 * m0 + eps)
        r1 = jax.lax.rsqrt(q1 / cnt - m1 * m1 + eps)
        mean_row = jnp.where(mask0, m0, m1)
        rstd_row = jnp.where(mask0, r0, r1)

        y = (acc - mean_row) * (rstd_row * g_ref[...]) + be_ref[...]
        return y * jax.nn.sigmoid(y)                   # SiLU

    # ---- 2) ResidualBlock: (Conv3x3 + GroupNorm(2) + SiLU) x 2, fully fused.
    r = conv3x3_gn_silu(up, b1w_ref, b1b_ref, g1_ref, be1_ref)
    r = conv3x3_gn_silu(r, b2w_ref, b2b_ref, g2_ref, be2_ref)

    # ---- 3) conv_adjust (1x1, 2C->C): concat-free dual matmul.
    out = jnp.dot(up, wu_ref[...], preferred_element_type=jnp.float32)
    out = out + jnp.dot(r, wr_ref[...], preferred_element_type=jnp.float32)
    o_ref[0] = (out + adjb_ref[...]).astype(o_ref.dtype)


def upblock_fused(x_f, s_f, wp, C):
    """x_f/s_f: (N, H, W*C) lane-fused.  Returns (N, 2H, 2W*C) lane-fused."""
    N, H, WC = x_f.shape
    Ho = 2 * H
    W2C = 2 * WC
    kernel = functools.partial(_upblock_fused_kernel, channels=C)
    vec_spec = pl.BlockSpec((1, W2C), lambda n: (0, 0))
    return pl.pallas_call(
        kernel,
        out_shape=jax.ShapeDtypeStruct((N, Ho, W2C), jnp.float32),
        grid=(N,),
        in_specs=[
            pl.BlockSpec((1, H, WC), lambda n: (n, 0, 0)),      # x
            pl.BlockSpec((1, H, WC), lambda n: (n, 0, 0)),      # skip
            pl.BlockSpec((2, WC, W2C), lambda n: (0, 0, 0)),    # Ax
            pl.BlockSpec((2, WC, W2C), lambda n: (0, 0, 0)),    # As
            vec_spec,                                           # up bias
            pl.BlockSpec((3, W2C, W2C), lambda n: (0, 0, 0)),   # B1
            vec_spec, vec_spec, vec_spec,                       # b1, g1, be1
            pl.BlockSpec((3, W2C, W2C), lambda n: (0, 0, 0)),   # B2
            vec_spec, vec_spec, vec_spec,                       # b2, g2, be2
            pl.BlockSpec((W2C, W2C), lambda n: (0, 0)),         # Wu
            pl.BlockSpec((W2C, W2C), lambda n: (0, 0)),         # Wr
            vec_spec,                                           # adj bias
        ],
        out_specs=pl.BlockSpec((1, Ho, W2C), lambda n: (n, 0, 0)),
        scratch_shapes=[pltpu.VMEM((Ho + 2, W2C), jnp.float32)],
        compiler_params=pltpu.CompilerParams(
            dimension_semantics=("parallel",),
            vmem_limit_bytes=_VMEM_LIMIT),
    )(x_f, s_f, wp['Ax'], wp['As'], wp['up_b'],
      wp['B1'], wp['b1'], wp['g1'], wp['be1'],
      wp['B2'], wp['b2'], wp['g2'], wp['be2'],
      wp['Wu'], wp['Wr'], wp['adj_b'])


# ------------------------- one-time weight preparation -----------------------

def _prep_convT(up_w, up_b, W, C):
    """torch ConvTranspose2d weight (2C, C, 2, 2) -> per-kh expansion matrices.

    A_kh[w*C + ci, (2w+kw)*C + co] = W_part[ci, co, kh, kw]
    """
    Wx, Ws = up_w[:C], up_w[C:]
    eyeW = jnp.eye(W, dtype=up_w.dtype)

    def mats(wpart):
        out = []
        for kh in range(2):
            blk = jnp.concatenate([wpart[:, :, kh, 0], wpart[:, :, kh, 1]],
                                  axis=1)                       # (C, 2C)
            out.append(jnp.kron(eyeW, blk))                     # (W*C, 2W*C)
        return jnp.stack(out)                                   # (2, W*C, 2W*C)

    bias_f = jnp.tile(up_b, 2 * W).reshape(1, 2 * W * C)
    return mats(Wx), mats(Ws), bias_f


def _prep_conv3x3(w_oihw, b, Wo, C):
    """torch Conv2d weight (C, C, 3, 3) -> per-kh banded matrices acting on the
    UNPADDED width (boundary kw taps dropped = zero W-padding folded in).

    B_kh[(w+kw-1)*C + ci, w*C + co] = w[co, ci, kh, kw]   (valid rows only)
    """
    WoC = Wo * C
    eyeW = jnp.eye(Wo, dtype=w_oihw.dtype)
    Bs = []
    for kh in range(3):
        B = jnp.zeros((WoC, WoC), w_oihw.dtype)
        for kw in range(3):
            blk = jnp.kron(eyeW, jnp.transpose(w_oihw[:, :, kh, kw]))
            sh = (kw - 1) * C
            if sh == 0:
                B = B + blk
            elif sh > 0:
                B = B + jnp.pad(blk[:-sh, :], ((sh, 0), (0, 0)))
            else:
                B = B + jnp.pad(blk[-sh:, :], ((0, -sh), (0, 0)))
        Bs.append(B)
    bias_f = jnp.tile(b, Wo).reshape(1, WoC)
    return jnp.stack(Bs), bias_f                                # (3, WoC, WoC)


def prepare_upblock_weights(p, W, C):
    """One-time relayout of torch-style params into lane-fused kernel weights."""
    W2 = 2 * W
    W2C = W2 * C
    Ax, As, up_b = _prep_convT(p['up_w'], p['up_b'], W, C)
    B1, b1 = _prep_conv3x3(p['rc1_w'], p['rc1_b'], W2, C)
    B2, b2 = _prep_conv3x3(p['rc2_w'], p['rc2_b'], W2, C)
    g1 = jnp.tile(p['gn1_g'], W2).reshape(1, W2C)
    be1 = jnp.tile(p['gn1_b'], W2).reshape(1, W2C)
    g2 = jnp.tile(p['gn2_g'], W2).reshape(1, W2C)
    be2 = jnp.tile(p['gn2_b'], W2).reshape(1, W2C)
    eyeW2 = jnp.eye(W2, dtype=p['adj_w'].dtype)
    Wu = jnp.kron(eyeW2, p['adj_w'][:, :C, 0, 0].T)
    Wr = jnp.kron(eyeW2, p['adj_w'][:, C:, 0, 0].T)
    adj_b = jnp.tile(p['adj_b'], W2).reshape(1, W2C)
    return dict(Ax=Ax, As=As, up_b=up_b,
                B1=B1, b1=b1, g1=g1, be1=be1,
                B2=B2, b2=b2, g2=g2, be2=be2,
                Wu=Wu, Wr=Wr, adj_b=adj_b)


# ------------------------------ UpBlock forward -------------------------------

@jax.jit
def upblock_forward(x_nchw, skip_nchw, wp):
    N, C, H, W = x_nchw.shape
    # NCHW -> lane-fused NHWC (N, H, W*C): one small relayout per input.
    x_f = jnp.transpose(x_nchw, (0, 2, 3, 1)).reshape(N, H, W * C)
    s_f = jnp.transpose(skip_nchw, (0, 2, 3, 1)).reshape(N, H, W * C)
    out_f = upblock_fused(x_f, s_f, wp, C)                      # (N, 2H, 2W*C)
    out = out_f.reshape(N, 2 * H, 2 * W, C)
    return jnp.transpose(out, (0, 3, 1, 2))                     # -> NCHW


# ------------------------------ pure-JAX reference ----------------------------

def upblock_ref(x_nchw, skip_nchw, p):
    x = jnp.transpose(x_nchw, (0, 2, 3, 1))
    skip = jnp.transpose(skip_nchw, (0, 2, 3, 1))
    N, H, W, C = x.shape
    xc = jnp.concatenate([x, skip], axis=-1)
    t = jnp.einsum('nhwi,iojk->nhjwko', xc, p['up_w'])   # (N,H,2,W,2,C)
    up = t.reshape(N, 2 * H, 2 * W, C) + p['up_b']

    def conv_gn_silu_ref(xx, w, b, g, bt):
        wk = jnp.transpose(w, (2, 3, 1, 0))              # HWIO
        y = jax.lax.conv_general_dilated(
            xx, wk, (1, 1), 'SAME',
            dimension_numbers=('NHWC', 'HWIO', 'NHWC')) + b
        Nn, Hh, Ww, Cc = y.shape
        yg = y.reshape(Nn, Hh, Ww, 2, Cc // 2)
        mean = yg.mean(axis=(1, 2, 4), keepdims=True)
        var = ((yg - mean) ** 2).mean(axis=(1, 2, 4), keepdims=True)
        yn = ((yg - mean) / jnp.sqrt(var + 1e-5)).reshape(Nn, Hh, Ww, Cc)
        yn = yn * g + bt
        return yn * jax.nn.sigmoid(yn)

    r = conv_gn_silu_ref(up, p['rc1_w'], p['rc1_b'], p['gn1_g'], p['gn1_b'])
    r = conv_gn_silu_ref(r, p['rc2_w'], p['rc2_b'], p['gn2_g'], p['gn2_b'])
    cat = jnp.concatenate([up, r], axis=-1)
    out = jnp.einsum('nhwi,oi->nhwo', cat, p['adj_w'][:, :, 0, 0]) + p['adj_b']
    return jnp.transpose(out, (0, 3, 1, 2))


# --------------------------------- params -------------------------------------

def init_params(key, C):
    ks = jax.random.split(key, 12)

    def w(k, shape, fan_in):
        return jax.random.normal(k, shape, jnp.float32) / np.sqrt(fan_in)

    p = {}
    # ConvTranspose2d(in=2C, out=C, 2, 2): weight (2C, C, 2, 2)
    p['up_w'] = w(ks[0], (2 * C, C, 2, 2), 2 * C * 4)
    p['up_b'] = 0.1 * w(ks[1], (C,), 1)
    # ResidualBlock conv1 + GN1
    p['rc1_w'] = w(ks[2], (C, C, 3, 3), C * 9)
    p['rc1_b'] = 0.1 * w(ks[3], (C,), 1)
    p['gn1_g'] = 1.0 + 0.1 * jax.random.normal(ks[4], (C,), jnp.float32)
    p['gn1_b'] = 0.1 * jax.random.normal(ks[5], (C,), jnp.float32)
    # ResidualBlock conv2 + GN2
    p['rc2_w'] = w(ks[6], (C, C, 3, 3), C * 9)
    p['rc2_b'] = 0.1 * w(ks[7], (C,), 1)
    p['gn2_g'] = 1.0 + 0.1 * jax.random.normal(ks[8], (C,), jnp.float32)
    p['gn2_b'] = 0.1 * jax.random.normal(ks[9], (C,), jnp.float32)
    # conv_adjust 1x1: weight (C, 2C, 1, 1)
    p['adj_w'] = w(ks[10], (C, 2 * C, 1, 1), 2 * C)
    p['adj_b'] = 0.1 * w(ks[11], (C,), 1)
    return p


if __name__ == "__main__":
    key = jax.random.PRNGKey(0)
    kx, ks, kp = jax.random.split(key, 3)
    # in_channels == out_channels == 4 (required for the module's shapes to match)
    N, C, H, W = 2, 4, 16, 16
    x = jax.random.normal(kx, (N, C, H, W), jnp.float32)
    skip = jax.random.normal(ks, (N, C, H, W), jnp.float32)
    params = init_params(kp, C)

    # One-time weight prep (kron / banding / lane tiling) off the hot path.
    wprep = jax.tree_util.tree_map(jax.block_until_ready,
                                   prepare_upblock_weights(params, W, C))

    out = upblock_forward(x, skip, wprep)
    out = jax.block_until_ready(out)
    assert out.shape == (N, C, 2 * H, 2 * W)

    ref = upblock_ref(x, skip, params)
    np.testing.assert_allclose(np.asarray(out), np.asarray(ref),
                               rtol=1e-4, atol=1e-4)
    print("KERNEL_OK")
</pallas_src>

<mosaic_0001>
module attributes {stable_mosaic.version = 11 : i64} {
  func.func @_upblock_fused_kernel(%arg0: i32, %arg1: memref<1x16x64xf32, #tpu.memory_space<vmem>>, %arg2: memref<1x16x64xf32, #tpu.memory_space<vmem>>, %arg3: memref<2x64x128xf32, #tpu.memory_space<vmem>>, %arg4: memref<2x64x128xf32, #tpu.memory_space<vmem>>, %arg5: memref<1x128xf32, #tpu.memory_space<vmem>>, %arg6: memref<3x128x128xf32, #tpu.memory_space<vmem>>, %arg7: memref<1x128xf32, #tpu.memory_space<vmem>>, %arg8: memref<1x128xf32, #tpu.memory_space<vmem>>, %arg9: memref<1x128xf32, #tpu.memory_space<vmem>>, %arg10: memref<3x128x128xf32, #tpu.memory_space<vmem>>, %arg11: memref<1x128xf32, #tpu.memory_space<vmem>>, %arg12: memref<1x128xf32, #tpu.memory_space<vmem>>, %arg13: memref<1x128xf32, #tpu.memory_space<vmem>>, %arg14: memref<128x128xf32, #tpu.memory_space<vmem>>, %arg15: memref<128x128xf32, #tpu.memory_space<vmem>>, %arg16: memref<1x128xf32, #tpu.memory_space<vmem>>, %arg17: memref<1x32x128xf32, #tpu.memory_space<vmem>>, %arg18: memref<34x128xf32, #tpu.memory_space<vmem>>) attributes {dimension_semantics = [#tpu.dimension_semantics<parallel>], iteration_bounds = array<i64: 2>, scalar_prefetch = 0 : i64, scratch_operands = 1 : i64, tpu.core_type = #tpu.core_type<tc>, window_params = [{transform_indices = @transform_0, window_bounds = array<i64: 1, 16, 64>}, {transform_indices = @transform_1, window_bounds = array<i64: 1, 16, 64>}, {pipeline_mode = #tpu.pipeline_mode<synchronous>, transform_indices = @transform_2, window_bounds = array<i64: 2, 64, 128>}, {pipeline_mode = #tpu.pipeline_mode<synchronous>, transform_indices = @transform_3, window_bounds = array<i64: 2, 64, 128>}, {pipeline_mode = #tpu.pipeline_mode<synchronous>, transform_indices = @transform_4, window_bounds = array<i64: 1, 128>}, {pipeline_mode = #tpu.pipeline_mode<synchronous>, transform_indices = @transform_5, window_bounds = array<i64: 3, 128, 128>}, {pipeline_mode = #tpu.pipeline_mode<synchronous>, transform_indices = @transform_6, window_bounds = array<i64: 1, 128>}, {pipeline_mode = #tpu.pipeline_mode<synchronous>, transform_indices = @transform_7, window_bounds = array<i64: 1, 128>}, {pipeline_mode = #tpu.pipeline_mode<synchronous>, transform_indices = @transform_8, window_bounds = array<i64: 1, 128>}, {pipeline_mode = #tpu.pipeline_mode<synchronous>, transform_indices = @transform_9, window_bounds = array<i64: 3, 128, 128>}, {pipeline_mode = #tpu.pipeline_mode<synchronous>, transform_indices = @transform_10, window_bounds = array<i64: 1, 128>}, {pipeline_mode = #tpu.pipeline_mode<synchronous>, transform_indices = @transform_11, window_bounds = array<i64: 1, 128>}, {pipeline_mode = #tpu.pipeline_mode<synchronous>, transform_indices = @transform_12, window_bounds = array<i64: 1, 128>}, {pipeline_mode = #tpu.pipeline_mode<synchronous>, transform_indices = @transform_13, window_bounds = array<i64: 128, 128>}, {pipeline_mode = #tpu.pipeline_mode<synchronous>, transform_indices = @transform_14, window_bounds = array<i64: 128, 128>}, {pipeline_mode = #tpu.pipeline_mode<synchronous>, transform_indices = @transform_15, window_bounds = array<i64: 1, 128>}, {transform_indices = @transform_16, window_bounds = array<i64: 1, 32, 128>}]} {
    %c0 = arith.constant 0 : index
    %c0_0 = arith.constant 0 : index
    %c0_1 = arith.constant 0 : index
    %0 = vector.load %arg1[%c0, %c0_0, %c0_1] : memref<1x16x64xf32, #tpu.memory_space<vmem>>, vector<1x16x64xf32>
    %1 = vector.shape_cast %0 : vector<1x16x64xf32> to vector<16x64xf32>
    %c0_2 = arith.constant 0 : index
    %c0_3 = arith.constant 0 : index
    %c0_4 = arith.constant 0 : index
    %2 = vector.load %arg2[%c0_2, %c0_3, %c0_4] : memref<1x16x64xf32, #tpu.memory_space<vmem>>, vector<1x16x64xf32>
    %3 = vector.shape_cast %2 : vector<1x16x64xf32> to vector<16x64xf32>
    %c0_5 = arith.constant 0 : index
    %c0_6 = arith.constant 0 : index
    %c0_7 = arith.constant 0 : index
    %4 = vector.load %arg3[%c0_5, %c0_6, %c0_7] : memref<2x64x128xf32, #tpu.memory_space<vmem>>, vector<1x64x128xf32>
    %5 = vector.shape_cast %4 : vector<1x64x128xf32> to vector<64x128xf32>
    %cst = arith.constant dense<0.000000e+00> : vector<16x128xf32>
    %6 = tpu.matmul %1, %5, %cst {dimension_numbers = #tpu.dot_dimension_numbers<[1], [0], [0], [1], [0, 0, 1, 1], [], []>} : vector<16x64xf32>, vector<64x128xf32>, vector<16x128xf32> -> vector<16x128xf32>
    %c0_8 = arith.constant 0 : index
    %c0_9 = arith.constant 0 : index
    %c0_10 = arith.constant 0 : index
    %7 = vector.load %arg4[%c0_8, %c0_9, %c0_10] : memref<2x64x128xf32, #tpu.memory_space<vmem>>, vector<1x64x128xf32>
    %8 = vector.shape_cast %7 : vector<1x64x128xf32> to vector<64x128xf32>
    %cst_11 = arith.constant dense<0.000000e+00> : vector<16x128xf32>
    %9 = tpu.matmul %3, %8, %cst_11 {dimension_numbers = #tpu.dot_dimension_numbers<[1], [0], [0], [1], [0, 0, 1, 1], [], []>} : vector<16x64xf32>, vector<64x128xf32>, vector<16x128xf32> -> vector<16x128xf32>
    %10 = arith.addf %6, %9 : vector<16x128xf32>
    %c0_12 = arith.constant 0 : index
    %c0_13 = arith.constant 0 : index
    %11 = vector.load %arg5[%c0_12, %c0_13] : memref<1x128xf32, #tpu.memory_space<vmem>>, vector<1x128xf32>
    %12 = vector.broadcast %11 : vector<1x128xf32> to vector<16x128xf32>
    %13 = arith.addf %10, %12 : vector<16x128xf32>
    %c1 = arith.constant 1 : index
    %c0_14 = arith.constant 0 : index
    %c0_15 = arith.constant 0 : index
    %14 = vector.load %arg3[%c1, %c0_14, %c0_15] : memref<2x64x128xf32, #tpu.memory_space<vmem>>, vector<1x64x128xf32>
    %15 = vector.shape_cast %14 : vector<1x64x128xf32> to vector<64x128xf32>
    %cst_16 = arith.constant dense<0.000000e+00> : vector<16x128xf32>
    %16 = tpu.matmul %1, %15, %cst_16 {dimension_numbers = #tpu.dot_dimension_numbers<[1], [0], [0], [1], [0, 0, 1, 1], [], []>} : vector<16x64xf32>, vector<64x128xf32>, vector<16x128xf32> -> vector<16x128xf32>
    %c1_17 = arith.constant 1 : index
    %c0_18 = arith.constant 0 : index
    %c0_19 = arith.constant 0 : index
    %17 = vector.load %arg4[%c1_17, %c0_18, %c0_19] : memref<2x64x128xf32, #tpu.memory_space<vmem>>, vector<1x64x128xf32>
    %18 = vector.shape_cast %17 : vector<1x64x128xf32> to vector<64x128xf32>
    %cst_20 = arith.constant dense<0.000000e+00> : vector<16x128xf32>
    %19 = tpu.matmul %3, %18, %cst_20 {dimension_numbers = #tpu.dot_dimension_numbers<[1], [0], [0], [1], [0, 0, 1, 1], [], []>} : vector<16x64xf32>, vector<64x128xf32>, vector<16x128xf32> -> vector<16x128xf32>
    %20 = arith.addf %16, %19 : vector<16x128xf32>
    %c0_21 = arith.constant 0 : index
    %c0_22 = arith.constant 0 : index
    %21 = vector.load %arg5[%c0_21, %c0_22] : memref<1x128xf32, #tpu.memory_space<vmem>>, vector<1x128xf32>
    %22 = vector.broadcast %21 : vector<1x128xf32> to vector<16x128xf32>
    %23 = arith.addf %20, %22 : vector<16x128xf32>
    %24 = vector.shape_cast %13 : vector<16x128xf32> to vector<16x1x128xf32>
    %25 = vector.shape_cast %23 : vector<16x128xf32> to vector<16x1x128xf32>
    %26 = tpu.concatenate %24, %25 in 1 : vector<16x1x128xf32>, vector<16x1x128xf32> -> vector<16x2x128xf32>
    %27 = vector.shape_cast %26 : vector<16x2x128xf32> to vector<32x128xf32>
    %28 = tpu.iota {dimensions = array<i32: 1>} : vector<1x128xi32>
    %c4_i32 = arith.constant 4 : i32
    %c0_i32 = arith.constant 0 : i32
    %29 = arith.cmpi eq, %c4_i32, %c0_i32 : i32
    %c1_i32 = arith.constant 1 : i32
    %30 = arith.select %29, %c1_i32, %c4_i32 : i32
    %31 = vector.broadcast %30 : i32 to vector<1x128xi32>
    %32 = arith.remsi %28, %31 : vector<1x128xi32>
    %c0_i32_23 = arith.constant 0 : i32
    %33 = vector.broadcast %c0_i32_23 : i32 to vector<1x128xi32>
    %34 = arith.cmpi ne, %32, %33 : vector<1x128xi32>
    %c0_i32_24 = arith.constant 0 : i32
    %35 = vector.broadcast %c0_i32_24 : i32 to vector<1x128xi32>
    %36 = arith.cmpi slt, %32, %35 : vector<1x128xi32>
    %c0_i32_25 = arith.constant 0 : i32
    %37 = arith.cmpi slt, %30, %c0_i32_25 : i32
    %38 = vector.broadcast %37 : i1 to vector<1x128xi1>
    %39 = vector.broadcast %38 : vector<1x128xi1> to vector<1x128xi1>
    %40 = arith.xori %36, %39 : vector<1x128xi1>
    %41 = arith.andi %40, %34 : vector<1x128xi1>
    %42 = vector.broadcast %30 : i32 to vector<1x128xi32>
    %43 = arith.addi %32, %42 : vector<1x128xi32>
    %44 = arith.select %41, %43, %32 : vector<1x128xi1>, vector<1x128xi32>
    %c2_i32 = arith.constant 2 : i32
    %45 = vector.broadcast %c2_i32 : i32 to vector<1x128xi32>
    %46 = arith.cmpi slt, %44, %45 : vector<1x128xi32>
    %cst_26 = arith.constant 0.000000e+00 : f32
    %47 = vector.broadcast %cst_26 : f32 to vector<1x128xf32>
    %c0_27 = arith.constant 0 : index
    %c0_28 = arith.constant 0 : index
    %48 = vector.load %arg18[%c0_27, %c0_28] : memref<34x128xf32, #tpu.memory_space<vmem>>, vector<1x128xf32>
    tpu.vector_store %arg18[%c0_27, %c0_28], %47 {strides = array<i32>} : memref<34x128xf32, #tpu.memory_space<vmem>>, vector<1x128xf32>,
    %cst_29 = arith.constant 0.000000e+00 : f32
    %49 = vector.broadcast %cst_29 : f32 to vector<1x128xf32>
    %c33 = arith.constant 33 : index
    %c0_30 = arith.constant 0 : index
    %50 = vector.load %arg18[%c33, %c0_30] : memref<34x128xf32, #tpu.memory_space<vmem>>, vector<1x128xf32>
    tpu.vector_store %arg18[%c33, %c0_30], %49 {strides = array<i32>} : memref<34x128xf32, #tpu.memory_space<vmem>>, vector<1x128xf32>,
    %c1_31 = arith.constant 1 : index
    %c0_32 = arith.constant 0 : index
    %51 = vector.load %arg18[%c1_31, %c0_32] : memref<34x128xf32, #tpu.memory_space<vmem>>, vector<32x128xf32>
    tpu.vector_store %arg18[%c1_31, %c0_32], %27 {strides = array<i32>} : memref<34x128xf32, #tpu.memory_space<vmem>>, vector<32x128xf32>,
    %c0_33 = arith.constant 0 : index
    %c0_34 = arith.constant 0 : index
    %52 = vector.load %arg18[%c0_33, %c0_34] : memref<34x128xf32, #tpu.memory_space<vmem>>, vector<32x128xf32>
    %c0_35 = arith.constant 0 : index
    %c0_36 = arith.constant 0 : index
    %c0_37 = arith.constant 0 : index
    %53 = vector.load %arg6[%c0_35, %c0_36, %c0_37] : memref<3x128x128xf32, #tpu.memory_space<vmem>>, vector<1x128x128xf32>
    %54 = vector.shape_cast %53 : vector<1x128x128xf32> to vector<128x128xf32>
    %cst_38 = arith.constant dense<0.000000e+00> : vector<32x128xf32>
    %55 = tpu.matmul %52, %54, %cst_38 {dimension_numbers = #tpu.dot_dimension_numbers<[1], [0], [0], [1], [0, 0, 1, 1], [], []>} : vector<32x128xf32>, vector<128x128xf32>, vector<32x128xf32> -> vector<32x128xf32>
    %c1_39 = arith.constant 1 : index
    %c0_40 = arith.constant 0 : index
    %56 = vector.load %arg18[%c1_39, %c0_40] : memref<34x128xf32, #tpu.memory_space<vmem>>, vector<32x128xf32>
    %c1_41 = arith.constant 1 : index
    %c0_42 = arith.constant 0 : index
    %c0_43 = arith.constant 0 : index
    %57 = vector.load %arg6[%c1_41, %c0_42, %c0_43] : memref<3x128x128xf32, #tpu.memory_space<vmem>>, vector<1x128x128xf32>
    %58 = vector.shape_cast %57 : vector<1x128x128xf32> to vector<128x128xf32>
    %cst_44 = arith.constant dense<0.000000e+00> : vector<32x128xf32>
    %59 = tpu.matmul %56, %58, %cst_44 {dimension_numbers = #tpu.dot_dimension_numbers<[1], [0], [0], [1], [0, 0, 1, 1], [], []>} : vector<32x128xf32>, vector<128x128xf32>, vector<32x128xf32> -> vector<32x128xf32>
    %60 = arith.addf %55, %59 : vector<32x128xf32>
    %c2 = arith.constant 2 : index
    %c0_45 = arith.constant 0 : index
    %61 = vector.load %arg18[%c2, %c0_45] : memref<34x128xf32, #tpu.memory_space<vmem>>, vector<32x128xf32>
    %c2_46 = arith.constant 2 : index
    %c0_47 = arith.constant 0 : index
    %c0_48 = arith.constant 0 : index
    %62 = vector.load %arg6[%c2_46, %c0_47, %c0_48] : memref<3x128x128xf32, #tpu.memory_space<vmem>>, vector<1x128x128xf32>
    %63 = vector.shape_cast %62 : vector<1x128x128xf32> to vector<128x128xf32>
    %cst_49 = arith.constant dense<0.000000e+00> : vector<32x128xf32>
    %64 = tpu.matmul %61, %63, %cst_49 {dimension_numbers = #tpu.dot_dimension_numbers<[1], [0], [0], [1], [0, 0, 1, 1], [], []>} : vector<32x128xf32>, vector<128x128xf32>, vector<32x128xf32> -> vector<32x128xf32>
    %65 = arith.addf %60, %64 : vector<32x128xf32>
    %c0_50 = arith.constant 0 : index
    %c0_51 = arith.constant 0 : index
    %66 = vector.load %arg7[%c0_50, %c0_51] : memref<1x128xf32, #tpu.memory_space<vmem>>, vector<1x128xf32>
    %67 = vector.broadcast %66 : vector<1x128xf32> to vector<32x128xf32>
    %68 = arith.addf %65, %67 : vector<32x128xf32>
    %69 = arith.mulf %68, %68 : vector<32x128xf32>
    %70 = vector.shape_cast %68 : vector<32x128xf32> to vector<1x32x128xf32>
    %cst_52 = arith.constant dense<0.000000e+00> : vector<1xf32>
    %71 = vector.multi_reduction <add>, %70, %cst_52 [1, 2] : vector<1x32x128xf32> to vector<1xf32>
    %72 = vector.shape_cast %71 : vector<1xf32> to vector<1x1x1xf32>
    %73 = vector.extract %72[0, 0, 0] : f32 from vector<1x1x1xf32>
    %74 = vector.shape_cast %69 : vector<32x128xf32> to vector<1x32x128xf32>
    %cst_53 = arith.constant dense<0.000000e+00> : vector<1xf32>
    %75 = vector.multi_reduction <add>, %74, %cst_53 [1, 2] : vector<1x32x128xf32> to vector<1xf32>
    %76 = vector.shape_cast %75 : vector<1xf32> to vector<1x1x1xf32>
    %77 = vector.extract %76[0, 0, 0] : f32 from vector<1x1x1xf32>
    %cst_54 = arith.constant 0.000000e+00 : f32
    %78 = vector.shape_cast %46 : vector<1x128xi1> to vector<1x128xi1>
    %79 = vector.broadcast %78 : vector<1x128xi1> to vector<32x128xi1>
    %80 = vector.broadcast %cst_54 : f32 to vector<32x128xf32>
    %81 = arith.select %79, %68, %80 : vector<32x128xi1>, vector<32x128xf32>
    %82 = vector.shape_cast %81 : vector<32x128xf32> to vector<1x32x128xf32>
    %cst_55 = arith.constant dense<0.000000e+00> : vector<1xf32>
    %83 = vector.multi_reduction <add>, %82, %cst_55 [1, 2] : vector<1x32x128xf32> to vector<1xf32>
    %84 = vector.shape_cast %83 : vector<1xf32> to vector<1x1x1xf32>
    %85 = vector.extract %84[0, 0, 0] : f32 from vector<1x1x1xf32>
    %cst_56 = arith.constant 0.000000e+00 : f32
    %86 = vector.shape_cast %46 : vector<1x128xi1> to vector<1x128xi1>
    %87 = vector.broadcast %86 : vector<1x128xi1> to vector<32x128xi1>
    %88 = vector.broadcast %cst_56 : f32 to vector<32x128xf32>
    %89 = arith.select %87, %69, %88 : vector<32x128xi1>, vector<32x128xf32>
    %90 = vector.shape_cast %89 : vector<32x128xf32> to vector<1x32x128xf32>
    %cst_57 = arith.constant dense<0.000000e+00> : vector<1xf32>
    %91 = vector.multi_reduction <add>, %90, %cst_57 [1, 2] : vector<1x32x128xf32> to vector<1xf32>
    %92 = vector.shape_cast %91 : vector<1xf32> to vector<1x1x1xf32>
    %93 = vector.extract %92[0, 0, 0] : f32 from vector<1x1x1xf32>
    %94 = arith.subf %73, %85 : f32
    %95 = arith.subf %77, %93 : f32
    %cst_58 = arith.constant 2.048000e+03 : f32
    %96 = arith.divf %85, %cst_58 : f32
    %cst_59 = arith.constant 2.048000e+03 : f32
    %97 = arith.divf %94, %cst_59 : f32
    %cst_60 = arith.constant 2.048000e+03 : f32
    %98 = arith.divf %93, %cst_60 : f32
    %99 = arith.mulf %96, %96 : f32
    %100 = arith.subf %98, %99 : f32
    %cst_61 = arith.constant 9.99999974E-6 : f32
    %101 = arith.addf %100, %cst_61 : f32
    %102 = math.rsqrt %101 : f32
    %cst_62 = arith.constant 2.048000e+03 : f32
    %103 = arith.divf %95, %cst_62 : f32
    %104 = arith.mulf %97, %97 : f32
    %105 = arith.subf %103, %104 : f32
    %cst_63 = arith.constant 9.99999974E-6 : f32
    %106 = arith.addf %105, %cst_63 : f32
    %107 = math.rsqrt %106 : f32
    %108 = vector.broadcast %96 : f32 to vector<1x128xf32>
    %109 = vector.broadcast %97 : f32 to vector<1x128xf32>
    %110 = arith.select %46, %108, %109 : vector<1x128xi1>, vector<1x128xf32>
    %111 = vector.broadcast %102 : f32 to vector<1x128xf32>
    %112 = vector.broadcast %107 : f32 to vector<1x128xf32>
    %113 = arith.select %46, %111, %112 : vector<1x128xi1>, vector<1x128xf32>
    %114 = vector.broadcast %110 : vector<1x128xf32> to vector<32x128xf32>
    %115 = arith.subf %68, %114 : vector<32x128xf32>
    %c0_64 = arith.constant 0 : index
    %c0_65 = arith.constant 0 : index
    %116 = vector.load %arg8[%c0_64, %c0_65] : memref<1x128xf32, #tpu.memory_space<vmem>>, vector<1x128xf32>
    %117 = arith.mulf %113, %116 : vector<1x128xf32>
    %118 = vector.broadcast %117 : vector<1x128xf32> to vector<32x128xf32>
    %119 = arith.mulf %115, %118 : vector<32x128xf32>
    %c0_66 = arith.constant 0 : index
    %c0_67 = arith.constant 0 : index
    %120 = vector.load %arg9[%c0_66, %c0_67] : memref<1x128xf32, #tpu.memory_space<vmem>>, vector<1x128xf32>
    %121 = vector.broadcast %120 : vector<1x128xf32> to vector<32x128xf32>
    %122 = arith.addf %119, %121 : vector<32x128xf32>
    %123 = arith.negf %122 : vector<32x128xf32>
    %124 = math.exp %123 : vector<32x128xf32>
    %cst_68 = arith.constant 1.000000e+00 : f32
    %125 = vector.broadcast %cst_68 : f32 to vector<32x128xf32>
    %126 = arith.addf %125, %124 : vector<32x128xf32>
    %127 = arith.divf %125, %126 : vector<32x128xf32>
    %128 = arith.mulf %122, %127 : vector<32x128xf32>
    %c1_69 = arith.constant 1 : index
    %c0_70 = arith.constant 0 : index
    %129 = vector.load %arg18[%c1_69, %c0_70] : memref<34x128xf32, #tpu.memory_space<vmem>>, vector<32x128xf32>
    tpu.vector_store %arg18[%c1_69, %c0_70], %128 {strides = array<i32>} : memref<34x128xf32, #tpu.memory_space<vmem>>, vector<32x128xf32>,
    %c0_71 = arith.constant 0 : index
    %c0_72 = arith.constant 0 : index
    %130 = vector.load %arg18[%c0_71, %c0_72] : memref<34x128xf32, #tpu.memory_space<vmem>>, vector<32x128xf32>
    %c0_73 = arith.constant 0 : index
    %c0_74 = arith.constant 0 : index
    %c0_75 = arith.constant 0 : index
    %131 = vector.load %arg10[%c0_73, %c0_74, %c0_75] : memref<3x128x128xf32, #tpu.memory_space<vmem>>, vector<1x128x128xf32>
    %132 = vector.shape_cast %131 : vector<1x128x128xf32> to vector<128x128xf32>
    %cst_76 = arith.constant dense<0.000000e+00> : vector<32x128xf32>
    %133 = tpu.matmul %130, %132, %cst_76 {dimension_numbers = #tpu.dot_dimension_numbers<[1], [0], [0], [1], [0, 0, 1, 1], [], []>} : vector<32x128xf32>, vector<128x128xf32>, vector<32x128xf32> -> vector<32x128xf32>
    %c1_77 = arith.constant 1 : index
    %c0_78 = arith.constant 0 : index
    %134 = vector.load %arg18[%c1_77, %c0_78] : memref<34x128xf32, #tpu.memory_space<vmem>>, vector<32x128xf32>
    %c1_79 = arith.constant 1 : index
    %c0_80 = arith.constant 0 : index
    %c0_81 = arith.constant 0 : index
    %135 = vector.load %arg10[%c1_79, %c0_80, %c0_81] : memref<3x128x128xf32, #tpu.memory_space<vmem>>, vector<1x128x128xf32>
    %136 = vector.shape_cast %135 : vector<1x128x128xf32> to vector<128x128xf32>
    %cst_82 = arith.constant dense<0.000000e+00> : vector<32x128xf32>
    %137 = tpu.matmul %134, %136, %cst_82 {dimension_numbers = #tpu.dot_dimension_numbers<[1], [0], [0], [1], [0, 0, 1, 1], [], []>} : vector<32x128xf32>, vector<128x128xf32>, vector<32x128xf32> -> vector<32x128xf32>
    %138 = arith.addf %133, %137 : vector<32x128xf32>
    %c2_83 = arith.constant 2 : index
    %c0_84 = arith.constant 0 : index
    %139 = vector.load %arg18[%c2_83, %c0_84] : memref<34x128xf32, #tpu.memory_space<vmem>>, vector<32x128xf32>
    %c2_85 = arith.constant 2 : index
    %c0_86 = arith.constant 0 : index
    %c0_87 = arith.constant 0 : index
    %140 = vector.load %arg10[%c2_85, %c0_86, %c0_87] : memref<3x128x128xf32, #tpu.memory_space<vmem>>, vector<1x128x128xf32>
    %141 = vector.shape_cast %140 : vector<1x128x128xf32> to vector<128x128xf32>
    %cst_88 = arith.constant dense<0.000000e+00> : vector<32x128xf32>
    %142 = tpu.matmul %139, %141, %cst_88 {dimension_numbers = #tpu.dot_dimension_numbers<[1], [0], [0], [1], [0, 0, 1, 1], [], []>} : vector<32x128xf32>, vector<128x128xf32>, vector<32x128xf32> -> vector<32x128xf32>
    %143 = arith.addf %138, %142 : vector<32x128xf32>
    %c0_89 = arith.constant 0 : index
    %c0_90 = arith.constant 0 : index
    %144 = vector.load %arg11[%c0_89, %c0_90] : memref<1x128xf32, #tpu.memory_space<vmem>>, vector<1x128xf32>
    %145 = vector.broadcast %144 : vector<1x128xf32> to vector<32x128xf32>
    %146 = arith.addf %143, %145 : vector<32x128xf32>
    %147 = arith.mulf %146, %146 : vector<32x128xf32>
    %148 = vector.shape_cast %146 : vector<32x128xf32> to vector<1x32x128xf32>
    %cst_91 = arith.constant dense<0.000000e+00> : vector<1xf32>
    %149 = vector.multi_reduction <add>, %148, %cst_91 [1, 2] : vector<1x32x128xf32> to vector<1xf32>
    %150 = vector.shape_cast %149 : vector<1xf32> to vector<1x1x1xf32>
    %151 = vector.extract %150[0, 0, 0] : f32 from vector<1x1x1xf32>
    %152 = vector.shape_cast %147 : vector<32x128xf32> to vector<1x32x128xf32>
    %cst_92 = arith.constant dense<0.000000e+00> : vector<1xf32>
    %153 = vector.multi_reduction <add>, %152, %cst_92 [1, 2] : vector<1x32x128xf32> to vector<1xf32>
    %154 = vector.shape_cast %153 : vector<1xf32> to vector<1x1x1xf32>
    %155 = vector.extract %154[0, 0, 0] : f32 from vector<1x1x1xf32>
    %cst_93 = arith.constant 0.000000e+00 : f32
    %156 = vector.shape_cast %46 : vector<1x128xi1> to vector<1x128xi1>
    %157 = vector.broadcast %156 : vector<1x128xi1> to vector<32x128xi1>
    %158 = vector.broadcast %cst_93 : f32 to vector<32x128xf32>
    %159 = arith.select %157, %146, %158 : vector<32x128xi1>, vector<32x128xf32>
    %160 = vector.shape_cast %159 : vector<32x128xf32> to vector<1x32x128xf32>
    %cst_94 = arith.constant dense<0.000000e+00> : vector<1xf32>
    %161 = vector.multi_reduction <add>, %160, %cst_94 [1, 2] : vector<1x32x128xf32> to vector<1xf32>
    %162 = vector.shape_cast %161 : vector<1xf32> to vector<1x1x1xf32>
    %163 = vector.extract %162[0, 0, 0] : f32 from vector<1x1x1xf32>
    %cst_95 = arith.constant 0.000000e+00 : f32
    %164 = vector.shape_cast %46 : vector<1x128xi1> to vector<1x128xi1>
    %165 = vector.broadcast %164 : vector<1x128xi1> to vector<32x128xi1>
    %166 = vector.broadcast %cst_95 : f32 to vector<32x128xf32>
    %167 = arith.select %165, %147, %166 : vector<32x128xi1>, vector<32x128xf32>
    %168 = vector.shape_cast %167 : vector<32x128xf32> to vector<1x32x128xf32>
    %cst_96 = arith.constant dense<0.000000e+00> : vector<1xf32>
    %169 = vector.multi_reduction <add>, %168, %cst_96 [1, 2] : vector<1x32x128xf32> to vector<1xf32>
    %170 = vector.shape_cast %169 : vector<1xf32> to vector<1x1x1xf32>
    %171 = vector.extract %170[0, 0, 0] : f32 from vector<1x1x1xf32>
    %172 = arith.subf %151, %163 : f32
    %173 = arith.subf %155, %171 : f32
    %cst_97 = arith.constant 2.048000e+03 : f32
    %174 = arith.divf %163, %cst_97 : f32
    %cst_98 = arith.constant 2.048000e+03 : f32
    %175 = arith.divf %172, %cst_98 : f32
    %cst_99 = arith.constant 2.048000e+03 : f32
    %176 = arith.divf %171, %cst_99 : f32
    %177 = arith.mulf %174, %174 : f32
    %178 = arith.subf %176, %177 : f32
    %cst_100 = arith.constant 9.99999974E-6 : f32
    %179 = arith.addf %178, %cst_100 : f32
    %180 = math.rsqrt %179 : f32
    %cst_101 = arith.constant 2.048000e+03 : f32
    %181 = arith.divf %173, %cst_101 : f32
    %182 = arith.mulf %175, %175 : f32
    %183 = arith.subf %181, %182 : f32
    %cst_102 = arith.constant 9.99999974E-6 : f32
    %184 = arith.addf %183, %cst_102 : f32
    %185 = math.rsqrt %184 : f32
    %186 = vector.broadcast %174 : f32 to vector<1x128xf32>
    %187 = vector.broadcast %175 : f32 to vector<1x128xf32>
    %188 = arith.select %46, %186, %187 : vector<1x128xi1>, vector<1x128xf32>
    %189 = vector.broadcast %180 : f32 to vector<1x128xf32>
    %190 = vector.broadcast %185 : f32 to vector<1x128xf32>
    %191 = arith.select %46, %189, %190 : vector<1x128xi1>, vector<1x128xf32>
    %192 = vector.broadcast %188 : vector<1x128xf32> to vector<32x128xf32>
    %193 = arith.subf %146, %192 : vector<32x128xf32>
    %c0_103 = arith.constant 0 : index
    %c0_104 = arith.constant 0 : index
    %194 = vector.load %arg12[%c0_103, %c0_104] : memref<1x128xf32, #tpu.memory_space<vmem>>, vector<1x128xf32>
    %195 = arith.mulf %191, %194 : vector<1x128xf32>
    %196 = vector.broadcast %195 : vector<1x128xf32> to vector<32x128xf32>
    %197 = arith.mulf %193, %196 : vector<32x128xf32>
    %c0_105 = arith.constant 0 : index
    %c0_106 = arith.constant 0 : index
    %198 = vector.load %arg13[%c0_105, %c0_106] : memref<1x128xf32, #tpu.memory_space<vmem>>, vector<1x128xf32>
    %199 = vector.broadcast %198 : vector<1x128xf32> to vector<32x128xf32>
    %200 = arith.addf %197, %199 : vector<32x128xf32>
    %201 = arith.negf %200 : vector<32x128xf32>
    %202 = math.exp %201 : vector<32x128xf32>
    %cst_107 = arith.constant 1.000000e+00 : f32
    %203 = vector.broadcast %cst_107 : f32 to vector<32x128xf32>
    %204 = arith.addf %203, %202 : vector<32x128xf32>
    %205 = arith.divf %203, %204 : vector<32x128xf32>
    %206 = arith.mulf %200, %205 : vector<32x128xf32>
    %c0_108 = arith.constant 0 : index
    %c0_109 = arith.constant 0 : index
    %207 = vector.load %arg14[%c0_108, %c0_109] : memref<128x128xf32, #tpu.memory_space<vmem>>, vector<128x128xf32>
    %cst_110 = arith.constant dense<0.000000e+00> : vector<32x128xf32>
    %208 = tpu.matmul %27, %207, %cst_110 {dimension_numbers = #tpu.dot_dimension_numbers<[1], [0], [0], [1], [0, 0, 1, 1], [], []>} : vector<32x128xf32>, vector<128x128xf32>, vector<32x128xf32> -> vector<32x128xf32>
    %c0_111 = arith.constant 0 : index
    %c0_112 = arith.constant 0 : index
    %209 = vector.load %arg15[%c0_111, %c0_112] : memref<128x128xf32, #tpu.memory_space<vmem>>, vector<128x128xf32>
    %cst_113 = arith.constant dense<0.000000e+00> : vector<32x128xf32>
    %210 = tpu.matmul %206, %209, %cst_113 {dimension_numbers = #tpu.dot_dimension_numbers<[1], [0], [0], [1], [0, 0, 1, 1], [], []>} : vector<32x128xf32>, vector<128x128xf32>, vector<32x128xf32> -> vector<32x128xf32>
    %211 = arith.addf %208, %210 : vector<32x128xf32>
    %c0_114 = arith.constant 0 : index
    %c0_115 = arith.constant 0 : index
    %212 = vector.load %arg16[%c0_114, %c0_115] : memref<1x128xf32, #tpu.memory_space<vmem>>, vector<1x128xf32>
    %213 = vector.broadcast %212 : vector<1x128xf32> to vector<32x128xf32>
    %214 = arith.addf %211, %213 : vector<32x128xf32>
    %c0_116 = arith.constant 0 : index
    %c0_117 = arith.constant 0 : index
    %c0_118 = arith.constant 0 : index
    %215 = vector.load %arg17[%c0_116, %c0_117, %c0_118] : memref<1x32x128xf32, #tpu.memory_space<vmem>>, vector<1x32x128xf32>
    %216 = vector.shape_cast %215 : vector<1x32x128xf32> to vector<32x128xf32>
    %217 = vector.shape_cast %214 : vector<32x128xf32> to vector<1x32x128xf32>
    tpu.vector_store %arg17[%c0_116, %c0_117, %c0_118], %217 {strides = array<i32>} : memref<1x32x128xf32, #tpu.memory_space<vmem>>, vector<1x32x128xf32>,
    return
  }
  func.func @transform_0(%arg0: i32) -> (i32, i32, i32) {
    %c0_i32 = arith.constant 0 : i32
    %c0_i32_0 = arith.constant 0 : i32
    %c0_i32_1 = arith.constant 0 : i32
    return %arg0, %c0_i32, %c0_i32_0 : i32, i32, i32
  }
  func.func @transform_1(%arg0: i32) -> (i32, i32, i32) {
    %c0_i32 = arith.constant 0 : i32
    %c0_i32_0 = arith.constant 0 : i32
    %c0_i32_1 = arith.constant 0 : i32
    return %arg0, %c0_i32, %c0_i32_0 : i32, i32, i32
  }
  func.func @transform_2(%arg0: i32) -> (i32, i32, i32) {
    %c0_i32 = arith.constant 0 : i32
    %c0_i32_0 = arith.constant 0 : i32
    %c0_i32_1 = arith.constant 0 : i32
    %c0_i32_2 = arith.constant 0 : i32
    return %c0_i32, %c0_i32_0, %c0_i32_1 : i32, i32, i32
  }
  func.func @transform_3(%arg0: i32) -> (i32, i32, i32) {
    %c0_i32 = arith.constant 0 : i32
    %c0_i32_0 = arith.constant 0 : i32
    %c0_i32_1 = arith.constant 0 : i32
    %c0_i32_2 = arith.constant 0 : i32
    return %c0_i32, %c0_i32_0, %c0_i32_1 : i32, i32, i32
  }
  func.func @transform_4(%arg0: i32) -> (i32, i32) {
    %c0_i32 = arith.constant 0 : i32
    %c0_i32_0 = arith.constant 0 : i32
    %c0_i32_1 = arith.constant 0 : i32
    return %c0_i32, %c0_i32_0 : i32, i32
  }
  func.func @transform_5(%arg0: i32) -> (i32, i32, i32) {
    %c0_i32 = arith.constant 0 : i32
    %c0_i32_0 = arith.constant 0 : i32
    %c0_i32_1 = arith.constant 0 : i32
    %c0_i32_2 = arith.constant 0 : i32
    return %c0_i32, %c0_i32_0, %c0_i32_1 : i32, i32, i32
  }
  func.func @transform_6(%arg0: i32) -> (i32, i32) {
    %c0_i32 = arith.constant 0 : i32
    %c0_i32_0 = arith.constant 0 : i32
    %c0_i32_1 = arith.constant 0 : i32
    return %c0_i32, %c0_i32_0 : i32, i32
  }
  func.func @transform_7(%arg0: i32) -> (i32, i32) {
    %c0_i32 = arith.constant 0 : i32
    %c0_i32_0 = arith.constant 0 : i32
    %c0_i32_1 = arith.constant 0 : i32
    return %c0_i32, %c0_i32_0 : i32, i32
  }
  func.func @transform_8(%arg0: i32) -> (i32, i32) {
    %c0_i32 = arith.constant 0 : i32
    %c0_i32_0 = arith.constant 0 : i32
    %c0_i32_1 = arith.constant 0 : i32
    return %c0_i32, %c0_i32_0 : i32, i32
  }
  func.func @transform_9(%arg0: i32) -> (i32, i32, i32) {
    %c0_i32 = arith.constant 0 : i32
    %c0_i32_0 = arith.constant 0 : i32
    %c0_i32_1 = arith.constant 0 : i32
    %c0_i32_2 = arith.constant 0 : i32
    return %c0_i32, %c0_i32_0, %c0_i32_1 : i32, i32, i32
  }
  func.func @transform_10(%arg0: i32) -> (i32, i32) {
    %c0_i32 = arith.constant 0 : i32
    %c0_i32_0 = arith.constant 0 : i32
    %c0_i32_1 = arith.constant 0 : i32
    return %c0_i32, %c0_i32_0 : i32, i32
  }
  func.func @transform_11(%arg0: i32) -> (i32, i32) {
    %c0_i32 = arith.constant 0 : i32
    %c0_i32_0 = arith.constant 0 : i32
    %c0_i32_1 = arith.constant 0 : i32
    return %c0_i32, %c0_i32_0 : i32, i32
  }
  func.func @transform_12(%arg0: i32) -> (i32, i32) {
    %c0_i32 = arith.constant 0 : i32
    %c0_i32_0 = arith.constant 0 : i32
    %c0_i32_1 = arith.constant 0 : i32
    return %c0_i32, %c0_i32_0 : i32, i32
  }
  func.func @transform_13(%arg0: i32) -> (i32, i32) {
    %c0_i32 = arith.constant 0 : i32
    %c0_i32_0 = arith.constant 0 : i32
    %c0_i32_1 = arith.constant 0 : i32
    return %c0_i32, %c0_i32_0 : i32, i32
  }
  func.func @transform_14(%arg0: i32) -> (i32, i32) {
    %c0_i32 = arith.constant 0 : i32
    %c0_i32_0 = arith.constant 0 : i32
    %c0_i32_1 = arith.constant 0 : i32
    return %c0_i32, %c0_i32_0 : i32, i32
  }
  func.func @transform_15(%arg0: i32) -> (i32, i32) {
    %c0_i32 = arith.constant 0 : i32
    %c0_i32_0 = arith.constant 0 : i32
    %c0_i32_1 = arith.constant 0 : i32
    return %c0_i32, %c0_i32_0 : i32, i32
  }
  func.func @transform_16(%arg0: i32) -> (i32, i32, i32) {
    %c0_i32 = arith.constant 0 : i32
    %c0_i32_0 = arith.constant 0 : i32
    %c0_i32_1 = arith.constant 0 : i32
    return %arg0, %c0_i32, %c0_i32_0 : i32, i32, i32
  }
}

</mosaic_0001>

<bundles_post_ra>
// kernel: upblock_forward.1
= control target key start
LH: loop header
LB: loop body
LE: loop exit
PB: predicated region body
PF: predicated region fallthrough
CT: control target
= control target key end

     0   :  { %s4755_s0 = inlined_call_operand.vmem [shape: f32[2,16,64], index: 0, kind: input, shape index: {}]   ;;  %s4756_s1 = inlined_call_operand.vmem [shape: f32[2,16,64], index: 1, kind: input, shape index: {}]   ;;  %s4757_s2 = inlined_call_operand.hbm [shape: f32[2,64,128], index: 2, kind: input, shape index: {}]   ;;  %s4758_s3 = inlined_call_operand.hbm [shape: f32[2,64,128], index: 3, kind: input, shape index: {}]   ;;  %s4759_s4 = inlined_call_operand.vmem [shape: f32[1,128], index: 4, kind: input, shape index: {}]   ;;  %s4760_s5 = inlined_call_operand.vmem [shape: f32[3,128,128], index: 5, kind: input, shape index: {}]   ;;  %s4761_s6 = inlined_call_operand.vmem [shape: f32[1,128], index: 6, kind: input, shape index: {}]   ;;  %s4762_s7 = inlined_call_operand.vmem [shape: f32[1,128], index: 7, kind: input, shape index: {}]   ;;  %s4763_s8 = inlined_call_operand.vmem [shape: f32[1,128], index: 8, kind: input, shape index: {}]   ;;  %s4764_s9 = inlined_call_operand.vmem [shape: f32[3,128,128], index: 9, kind: input, shape index: {}]   ;;  %s4765_s10 = inlined_call_operand.vmem [shape: f32[1,128], index: 10, kind: input, shape index: {}]   ;;  %s4766_s11 = inlined_call_operand.vmem [shape: f32[1,128], index: 11, kind: input, shape index: {}]   ;;  %s4767_s12 = inlined_call_operand.vmem [shape: f32[1,128], index: 12, kind: input, shape index: {}]   ;;  %s4768_s13 = inlined_call_operand.hbm [shape: f32[128,128], index: 13, kind: input, shape index: {}]   ;;  %s4769_s14 = inlined_call_operand.hbm [shape: f32[128,128], index: 14, kind: input, shape index: {}]   ;;  %s4770_s15 = inlined_call_operand.vmem [shape: f32[1,128], index: 15, kind: input, shape index: {}]   ;;  %s4771_s16 = inlined_call_operand.vmem [shape: f32[2,32,128], index: 16, kind: output, shape index: {}]  }
   0x1   :  { %4775 = sst [smem:[#allocation14_spill]] %s4755_s0 }
   0x2   :  { %4776 = sst [smem:[#allocation15_spill]] %s4766_s11 }
   0x3   :  { %4777 = sst [smem:[#allocation16_spill]] %s4767_s12 }
   0x4   :  { %4778 = sst [smem:[#allocation17_spill]] %s4770_s15 }
   0x5   :  { %4779 = sst [smem:[#allocation18_spill]] %s4771_s16 }
   0x6   :  { %21 = vsyncpa [#allocation4], 0 }
   0x7   :  { %22 = vsyncpa [#allocation6], 0 }
   0x8   :  { %23 = vsyncpa [#allocation9], 0  ;;  %s4048_s21 = smov 0  }
   0x9 LB: > { %4780 = sst [smem:[#allocation13_spill]] %s3952_s21  ;;  %s4054_s22 = sadd.s32 4294967295, %s3952_s21   ;;  %s3952_s21 = sphi %s4048_s21, %s29_s21  }
   0xa   : > { %p2672_p0 = scmp.ge.s32.totalorder %s3952_s21, 1  ;;  %p406_p1 = scmp.lt.s32.totalorder %s3952_s21, 3 }
   0xb   : > { %p4773_p2 = scmp.eq.s32.totalorder %s4054_s22, 0  ;;  %s3954_s24 = smov [#allocation5]  }
   0xc   : > { %p4059_p3 = pnand %p2672_p0, %p406_p1  ;;  %s431_s25 = sshll.u32 %s3954_s24, 4  ;;  %s4063_s25 = int_to_ptr.vmem [resolvable:$true] %s431_s25 }
   0xd   : > { %s3955_s26 = smov [#allocation3]   ;;  %s3956_s29 = smov [#allocation7]  }
   0xe   : > { %s4781_s23 = scalar_select %p4059_p3, 1, 0 }
   0xf   : > { %p3744_p4 = pneg %p4059_p3  ;;  %s418_s27 = sshll.u32 %s3955_s26, 4  ;;  %s4067_s27 = int_to_ptr.vmem [resolvable:$true] %s418_s27 }
  0x10   : > { %s471_s30 = sshll.u32 %s3956_s29, 4  ;;  %s3957_s0 = smov [#allocation8]   ;;  %s4075_s30 = int_to_ptr.vmem [resolvable:$true] %s471_s30 }
  0x11   : > { %p4071_p5 = pnand %p4773_p2, %p3744_p4  ;;  %s4077_s17 = sshll.u32 %s3957_s0, 4  ;;  %s485_s17 = int_to_ptr.vmem [resolvable:$true] %s4077_s17 }
  0x12   : > { %s3822_s20 = scalar_lea.hbm %s4758_s3, 2048 }
  0x13   : > { %p3823_p6 = scmp.ne.s32.totalorder %s4758_s3, %s3822_s20  ;;  %p4087_p7 = pneg %p4071_p5 }
  0x14   : > { %p3829_p10 = scmp.lt.u32.totalorder %s3822_s20, %s4758_s3 }
  0x15   : > { %p3825_p8 = pnand %p4087_p7, %p3823_p6 }
  0x17   : > { %p3826_p9 = pneg %p3825_p8 }
  0x19   : > { %p3831_p11 = pnand %p3829_p10, %p3826_p9 }
  0x1b   : > { %3834 = shalt.err (!%p3831_p11)
}
  0x1c   : > { %s3835_s18 = scalar_lea.vmem %s4063_s25, 2048  ;;  %p3843_p1 = scmp.lt.s32.totalorder %s4063_s25, %s4063_s25 }
  0x1d   : > { %p3836_p12 = scmp.ne.s32.totalorder %s4063_s25, %s3835_s18  ;;  %p3844_p4 = scmp.lt.s32.totalorder %s3835_s18, %s3835_s18 }
  0x1f   : > { %p3838_p13 = pnand %p3836_p12, %p4087_p7  ;;  %p3845_p6 = por %p3844_p4, %p3843_p1 }
  0x21   : > { %p3839_p0 = pneg %p3838_p13 }
  0x23   : > { %p3846_p8 = pnand %p3845_p6, %p3839_p0 }
  0x25   : > { %3849 = shalt.err (!%p3846_p8)
}
  0x26   : > { %s3958_s19 = smov 128   ;;  %s3959_s20 = smov 8  }
  0x27   : > { %3750 = dma.hbm_to_vmem [thread:$0]  (!%p4071_p5), %s4758_s3, 2048, %s4063_s25, [#allocation6], %s3958_s19, %s3958_s19, %s3959_s20  }
  0x28   : > { %s3850_s18 = scalar_lea.hbm %s4757_s2, 2048 }
  0x29   : > { %p3851_p9 = scmp.ne.s32.totalorder %s4757_s2, %s3850_s18  ;;  %p3857_p12 = scmp.lt.u32.totalorder %s3850_s18, %s4757_s2 }
  0x2b   : > { %p3853_p10 = pnand %p3851_p9, %p4087_p7 }
  0x2d   : > { %p3854_p11 = pneg %p3853_p10 }
  0x2f   : > { %p3859_p13 = pnand %p3857_p12, %p3854_p11 }
  0x31   : > { %3862 = shalt.err (!%p3859_p13)
}
  0x32   : > { %s3863_s25 = scalar_lea.vmem %s4067_s27, 2048  ;;  %p3871_p6 = scmp.lt.s32.totalorder %s4067_s27, %s4067_s27 }
  0x33   : > { %p3864_p0 = scmp.ne.s32.totalorder %s4067_s27, %s3863_s25  ;;  %p3872_p8 = scmp.lt.s32.totalorder %s3863_s25, %s3863_s25 }
  0x35   : > { %p3866_p1 = pnand %p3864_p0, %p4087_p7  ;;  %p3873_p9 = por %p3872_p8, %p3871_p6 }
  0x37   : > { %p3867_p4 = pneg %p3866_p1 }
  0x39   : > { %p3874_p10 = pnand %p3873_p9, %p3867_p4 }
  0x3b   : > { %3877 = shalt.err (!%p3874_p10)
}
  0x3c   : > { %3747 = dma.hbm_to_vmem [thread:$0]  (!%p4071_p5), %s4757_s2, 2048, %s4067_s27, [#allocation4], %s3958_s19, %s3958_s19, %s3959_s20  }
  0x3d   : > { %s3878_s24 = scalar_lea.hbm %s4768_s13, 2048 }
  0x3e   : > { %p3879_p11 = scmp.ne.s32.totalorder %s4768_s13, %s3878_s24  ;;  %p3885_p0 = scmp.lt.u32.totalorder %s3878_s24, %s4768_s13 }
  0x40   : > { %p3881_p12 = pnand %p3879_p11, %p4087_p7 }
  0x42   : > { %p3882_p13 = pneg %p3881_p12 }
  0x44   : > { %p3887_p1 = pnand %p3885_p0, %p3882_p13 }
  0x46   : > { %3890 = shalt.err (!%p3887_p1)
}
  0x47   : > { %s3891_s27 = scalar_lea.vmem %s4075_s30, 2048  ;;  %p3899_p9 = scmp.lt.s32.totalorder %s4075_s30, %s4075_s30 }
  0x48   : > { %p3892_p4 = scmp.ne.s32.totalorder %s4075_s30, %s3891_s27  ;;  %p3900_p10 = scmp.lt.s32.totalorder %s3891_s27, %s3891_s27 }
  0x4a   : > { %p3894_p6 = pnand %p3892_p4, %p4087_p7  ;;  %p3901_p11 = por %p3900_p10, %p3899_p9 }
  0x4c   : > { %p3895_p8 = pneg %p3894_p6 }
  0x4e   : > { %p3902_p12 = pnand %p3901_p11, %p3895_p8 }
  0x50   : > { %3905 = shalt.err (!%p3902_p12)
}
  0x51   : > { %3753 = dma.hbm_to_vmem [thread:$0]  (!%p4071_p5), %s4768_s13, 2048, %s4075_s30, [#allocation6], %s3958_s19, %s3958_s19, %s3959_s20  }
  0x52   : > { %s3906_s16 = scalar_lea.hbm %s4769_s14, 2048 }
  0x53   : > { %p3907_p13 = scmp.ne.s32.totalorder %s4769_s14, %s3906_s16  ;;  %p3913_p4 = scmp.lt.u32.totalorder %s3906_s16, %s4769_s14 }
  0x55   : > { %p3909_p0 = pnand %p3907_p13, %p4087_p7 }
  0x57   : > { %p3910_p1 = pneg %p3909_p0 }
  0x59   : > { %p3915_p6 = pnand %p3913_p4, %p3910_p1 }
  0x5b   : > { %3918 = shalt.err (!%p3915_p6)
}
  0x5c   : > { %s3919_s18 = scalar_lea.vmem %s485_s17, 2048  ;;  %p3927_p11 = scmp.lt.s32.totalorder %s485_s17, %s485_s17 }
  0x5d   : > { %p3920_p8 = scmp.ne.s32.totalorder %s485_s17, %s3919_s18  ;;  %p3928_p12 = scmp.lt.s32.totalorder %s3919_s18, %s3919_s18 }
  0x5f   : > { %p3922_p9 = pnand %p3920_p8, %p4087_p7  ;;  %p3929_p2 = por %p3928_p12, %p3927_p11 }
  0x61   : > { %p3923_p10 = pneg %p3922_p9 }
  0x63   : > { %p3930_p3 = pnand %p3929_p2, %p3923_p10 }
  0x65   : > { %3933 = shalt.err (!%p3930_p3)
}
  0x66   : > { %3756 = dma.hbm_to_vmem [thread:$0]  (!%p4071_p5), %s4769_s14, 2048, %s485_s17, [#allocation9], %s3958_s19, %s3958_s19, %s3959_s20  }
  0x67   : > { %p4784_p13 = scmp.ne.s32.totalorder %s4781_s23, 0 }
  0x68   : > { %p4785_p7 = scmp.eq.s32.totalorder (!%p4784_p13), %s4054_s22, 0 }
  0x69   : > { %519 = sbr.rel (%p4784_p13) target bundleno = 1848 (0x738), region = 84 }
  0x70   : > { %3939 = dma.done.wait (%p4785_p7), [#allocation4], 2048   ;;  %p4786_p0 = pmov %p4785_p7 }
  0x72   : > { %3941 = vsyncadd (%p4786_p0), [#allocation4], 4294965248  ;;  %p4787_p2 = pmov %p4786_p0 }
  0x73   : > { %p4788_p3 = pmov %p4786_p0 }
  0x74   : > { %3943 = dma.done.wait (%p4787_p2), [#allocation6], 4096  }
  0x75   : > { %3945 = vsyncadd (%p4788_p3), [#allocation6], 4294963200  ;;  %p4789_p1 = pmov %p4786_p0 }
  0x76   : > { %p4790_p5 = pmov %p4786_p0 }
  0x77   : > { %3947 = dma.done.wait (%p4789_p1), [#allocation9], 2048  }
  0x78   : > { %3949 = vsyncadd (%p4790_p5), [#allocation9], 4294965248  ;;  %p586_p4 = scmp.lt.s32.totalorder %s4054_s22, 1  ;;  %v613_v0 = vld [vmem:[#allocation5] sm:$0xff]  ;;  %v614_v1 = vld [vmem:[#allocation5 + $0x8] sm:$0xff]  ;;  %vm621_vm0 = vcmask 523264  }
  0x79   : > { %v803_v2 = vld [vmem:[#allocation5 + $0x40] sm:$0xff]  ;;  %v3360_v3 = vpack.c.bf16 %v614_v1, %v613_v0  ;;  %v804_v4 = vld [vmem:[#allocation5 + $0x48] sm:$0xff]  ;;  %v615_v5 = vld [vmem:[#allocation5 + $0x10] sm:$0xff]  ;;  %s4791_s25 = sld [smem:[#allocation14_spill]]  ;;  %vm1259_vm1 = vcmask 1040384  }
  0x7a   : > { %s4800_s22 = smov (!%p586_p4, %s4054_s22), 1  ;;  %v616_v6 = vld [vmem:[#allocation5 + $0x18] sm:$0xff]  ;;  %v3392_v7 = vpack.c.bf16 %v804_v4, %v803_v2  ;;  %v805_v9 = vld [vmem:[#allocation5 + $0x50] sm:$0xff]  ;;  %v617_v11 = vld [vmem:[#allocation5 + $0x20] sm:$0xff] }
  0x7b   : > { %s2777_s21 = sshll.u32 %s4800_s22, 4  ;;  %v3364_v8 = vpack.c.bf16 %v616_v6, %v615_v5  ;;  %v806_v10 = vld [vmem:[#allocation5 + $0x58] sm:$0xff]  ;;  %3361 = vmatprep.subr.bf16.mxu0 %v3360_v3  ;;  %v618_v13 = vld [vmem:[#allocation5 + $0x28] sm:$0xff]  ;;  %v807_v14 = vld [vmem:[#allocation5 + $0x60] sm:$0xff] }
  0x7c   : > { %s4209_s17 = scalar_lea.vmem %s4756_s1, %s2777_s21  ;;  %v3396_v12 = vpack.c.bf16 %v806_v10, %v805_v9  ;;  %v808_v15 = vld [vmem:[#allocation5 + $0x68] sm:$0xff]  ;;  %3393 = vmatprep.subr.bf16.mxu1 %v3392_v7  ;;  %3363 = vmatpush3.bf16.msra.mxu0 %v3360_v3  ;;  %v3368_v16 = vpack.c.bf16 %v618_v13, %v617_v11  ;;  %v619_v19 = vld [vmem:[#allocation5 + $0x30] sm:$0xff]  ;;  %v620_v20 = vld [vmem:[#allocation5 + $0x38] sm:$0xff] }
  0x7d   : > { %3395 = vmatpush3.bf16.msra.mxu1 %v3392_v7  ;;  %3365 = vmatprep.subr.bf16.mxu0 %v3364_v8  ;;  %v603_v17 = vld [vmem:[%s4209_s17] sm:$0xff]  ;;  %v3400_v18 = vpack.c.bf16 %v808_v15, %v807_v14  ;;  %v809_v21 = vld [vmem:[#allocation5 + $0x70] sm:$0xff]  ;;  %v3372_v23 = vpack.c.bf16 %v620_v20, %v619_v19  ;;  %v605_v25 = vld [vmem:[#allocation3] sm:$0xff] }
  0x7e   : > { %3397 = vmatprep.subr.bf16.mxu1 %v3396_v12  ;;  %2996 = vmatprep.mubr.msk.f32.mxu0 %vm621_vm0, %v603_v17  ;;  %v810_v22 = vld [vmem:[#allocation5 + $0x78] sm:$0xff]  ;;  %v606_v26 = vld [vmem:[#allocation3 + $0x8] sm:$0xff]  ;;  %v794_v27 = vld [vmem:[#allocation3 + $0x40] sm:$0xff] }
  0x7f   : > { %3034 = vmatprep.mubr.msk.f32.mxu1 %vm621_vm0, %v603_v17  ;;  %v3404_v24 = vpack.c.bf16 %v810_v22, %v809_v21  ;;  %v795_v28 = vld [vmem:[#allocation3 + $0x48] sm:$0xff]  ;;  %v3376_v29 = vpack.c.bf16 %v606_v26, %v605_v25  ;;  %v607_v31 = vld [vmem:[#allocation3 + $0x10] sm:$0xff]  ;;  %v608_v32 = vld [vmem:[#allocation3 + $0x18] sm:$0xff]  ;;  %s4219_s11 = scalar_lea.vmem %s4791_s25, %s2777_s21 }
  0x80   : > { %3367 = vmatpush3.bf16.msra.mxu0 %v3364_v8  ;;  %v3408_v30 = vpack.c.bf16 %v795_v28, %v794_v27  ;;  %v796_v33 = vld [vmem:[#allocation3 + $0x50] sm:$0xff]  ;;  %v797_v34 = vld [vmem:[#allocation3 + $0x58] sm:$0xff]  ;;  %v604_v35 = vld [vmem:[%s4209_s17 + $0x8] sm:$0xff]  ;;  %v3380_v36 = vpack.c.bf16 %v608_v32, %v607_v31 }
  0x81   : > { %3399 = vmatpush3.bf16.msra.mxu1 %v3396_v12  ;;  %3369 = vmatprep.subr.bf16.mxu0 %v3368_v16  ;;  %v3412_v37 = vpack.c.bf16 %v797_v34, %v796_v33  ;;  %v609_v38 = vld [vmem:[#allocation3 + $0x20] sm:$0xff]  ;;  %v610_v39 = vld [vmem:[#allocation3 + $0x28] sm:$0xff]  ;;  %v601_v42 = vld [vmem:[%s4219_s11] sm:$0xff] }
  0x82   : > { %3401 = vmatprep.subr.bf16.mxu1 %v3400_v18  ;;  %v798_v40 = vld [vmem:[#allocation3 + $0x60] sm:$0xff]  ;;  %v799_v41 = vld [vmem:[#allocation3 + $0x68] sm:$0xff]  ;;  %v3384_v43 = vpack.c.bf16 %v610_v39, %v609_v38  ;;  %v611_v45 = vld [vmem:[#allocation3 + $0x30] sm:$0xff] }
  0x83   : > { %v3416_v44 = vpack.c.bf16 %v799_v41, %v798_v40  ;;  %v612_v46 = vld [vmem:[#allocation3 + $0x38] sm:$0xff]  ;;  %v800_v47 = vld [vmem:[#allocation3 + $0x70] sm:$0xff]  ;;  %v1390_v52 = vld [vmem:[%s4760_s5 + $0x8] sm:$0xff]  ;;  %v3961_v40 = vmov 1966171168  }
  0x84   : > { %3371 = vmatpush3.bf16.msra.mxu0 %v3368_v16  ;;  %v801_v48 = vld [vmem:[#allocation3 + $0x78] sm:$0xff]  ;;  %v3388_v49 = vpack.c.bf16 %v612_v46, %v611_v45  ;;  %v2699_v54 = vld [vmem:[%s4760_s5 + $0x88] sm:$0xff]  ;;  %v2700_v58 = vld [vmem:[%s4760_s5 + $0x90] sm:$0xff]  ;;  %v967_v41 = vunpack.c.l.s4 %v3961_v40  ;;  %v3962_v45 = vmov 1983009808  }
  0x85   : > { %3403 = vmatpush3.bf16.msra.mxu1 %v3400_v18  ;;  %3373 = vmatprep.subr.bf16.mxu0 %v3372_v23  ;;  %v3420_v50 = vpack.c.bf16 %v801_v48, %v800_v47  ;;  %v1389_v51 = vld [vmem:[%s4760_s5] sm:$0xff]  ;;  %v602_v57 = vld [vmem:[%s4219_s11 + $0x8] sm:$0xff]  ;;  %v2701_v59 = vld [vmem:[%s4760_s5 + $0x98] sm:$0xff]  ;;  %v1312_v46 = vunpack.c.l.s4 %v3962_v45 }
  0x86   : > { %3405 = vmatprep.subr.bf16.mxu1 %v3404_v24  ;;  %v2698_v53 = vld [vmem:[%s4760_s5 + $0x80] sm:$0xff]  ;;  %v3456_v55 = vpack.c.bf16 %v1390_v52, %v1389_v51  ;;  %v3428_v60 = vpack.c.bf16 %v2701_v59, %v2700_v58  ;;  %v2703_v62 = vld [vmem:[%s4760_s5 + $0xa8] sm:$0xff]  ;;  %v1391_v0 = vld [vmem:[%s4760_s5 + $0x10] sm:$0xff] }
  0x87   : > { %v3424_v56 = vpack.c.bf16 %v2699_v54, %v2698_v53  ;;  %v2702_v61 = vld [vmem:[%s4760_s5 + $0xa0] sm:$0xff]  ;;  %v1392_v1 = vld [vmem:[%s4760_s5 + $0x18] sm:$0xff]  ;;  %v2704_v3 = vld [vmem:[%s4760_s5 + $0xb0] sm:$0xff] }
  0x88   : > { %3375 = vmatpush3.bf16.msra.mxu0 %v3372_v23  ;;  %v3432_v63 = vpack.c.bf16 %v2703_v62, %v2702_v61  ;;  %v3460_v2 = vpack.c.bf16 %v1392_v1, %v1391_v0  ;;  %v2705_v4 = vld [vmem:[%s4760_s5 + $0xb8] sm:$0xff]  ;;  %v1393_v6 = vld [vmem:[%s4760_s5 + $0x20] sm:$0xff]  ;;  %v1394_v7 = vld [vmem:[%s4760_s5 + $0x28] sm:$0xff] }
  0x89   : > { %3407 = vmatpush3.bf16.msra.mxu1 %v3404_v24  ;;  %3377 = vmatprep.subr.bf16.mxu0 %v3376_v29  ;;  %v3436_v5 = vpack.c.bf16 %v2705_v4, %v2704_v3  ;;  %v3464_v8 = vpack.c.bf16 %v1394_v7, %v1393_v6  ;;  %v2706_v9 = vld [vmem:[%s4760_s5 + $0xc0] sm:$0xff]  ;;  %v2707_v10 = vld [vmem:[%s4760_s5 + $0xc8] sm:$0xff]  ;;  %v1395_v12 = vld [vmem:[%s4760_s5 + $0x30] sm:$0xff] }
  0x8a   : > { %3409 = vmatprep.subr.bf16.mxu1 %v3408_v30  ;;  %v3440_v11 = vpack.c.bf16 %v2707_v10, %v2706_v9  ;;  %v1396_v13 = vld [vmem:[%s4760_s5 + $0x38] sm:$0xff]  ;;  %v2708_v15 = vld [vmem:[%s4760_s5 + $0xd0] sm:$0xff]  ;;  %v1397_v18 = vld [vmem:[%s4760_s5 + $0x40] sm:$0xff] }
  0x8b   : > { %2997 = vmatmul.mubr.msk.f32.vlgmr.msra.gmra.mrb[0].mxu0 %vm621_vm0, %v604_v35  ;;  %v3468_v14 = vpack.c.bf16 %v1396_v13, %v1395_v12  ;;  %v2709_v16 = vld [vmem:[%s4760_s5 + $0xd8] sm:$0xff]  ;;  %v1398_v19 = vld [vmem:[%s4760_s5 + $0x48] sm:$0xff]  ;;  %v2710_v21 = vld [vmem:[%s4760_s5 + $0xe0] sm:$0xff] }
  0x8c   : > { %3379 = vmatpush3.bf16.msra.mxu0 %v3376_v29  ;;  %3035 = vmatmul.mubr.msk.f32.vlgmr.msra.gmra.mrb[0].mxu1 %vm621_vm0, %v604_v35  ;;  %v3444_v17 = vpack.c.bf16 %v2709_v16, %v2708_v15  ;;  %v3472_v20 = vpack.c.bf16 %v1398_v19, %v1397_v18  ;;  %v2711_v22 = vld [vmem:[%s4760_s5 + $0xe8] sm:$0xff]  ;;  %v1399_v24 = vld [vmem:[%s4760_s5 + $0x50] sm:$0xff]  ;;  %v1400_v25 = vld [vmem:[%s4760_s5 + $0x58] sm:$0xff] }
  0x8d   : > { %3411 = vmatpush3.bf16.msra.mxu1 %v3408_v30  ;;  %3381 = vmatprep.subr.bf16.mxu0 %v3380_v36  ;;  %v3448_v23 = vpack.c.bf16 %v2711_v22, %v2710_v21  ;;  %v3476_v26 = vpack.c.bf16 %v1400_v25, %v1399_v24  ;;  %v2712_v27 = vld [vmem:[%s4760_s5 + $0xf0] sm:$0xff]  ;;  %v2713_v28 = vld [vmem:[%s4760_s5 + $0xf8] sm:$0xff]  ;;  %v1401_v30 = vld [vmem:[%s4760_s5 + $0x60] sm:$0xff] }
  0x8e   : > { %3413 = vmatprep.subr.bf16.mxu1 %v3412_v37  ;;  %3015 = vmatprep.mubr.msk.f32.mxu0 %vm621_vm0, %v601_v42  ;;  %v3452_v29 = vpack.c.bf16 %v2713_v28, %v2712_v27  ;;  %v1402_v31 = vld [vmem:[%s4760_s5 + $0x68] sm:$0xff]  ;;  %v1403_v33 = vld [vmem:[%s4760_s5 + $0x70] sm:$0xff]  ;;  %v1404_v34 = vld [vmem:[%s4760_s5 + $0x78] sm:$0xff] }
  0x8f   : > { %3053 = vmatprep.mubr.msk.f32.mxu1 %vm621_vm0, %v601_v42  ;;  %v3480_v32 = vpack.c.bf16 %v1402_v31, %v1401_v30  ;;  %v3484_v35 = vpack.c.bf16 %v1404_v34, %v1403_v33  ;;  %v2715_v38 = vld [vmem:[%s4760_s5 + $0x108] sm:$0xff]  ;;  %v969_v42 = vlaneseq  ;;  %v2693_v47 = vld [vmem:[%s4759_s4] ss:$0 sm:$0xff] }
  0x90   : > { %3383 = vmatpush3.bf16.msra.mxu0 %v3380_v36  ;;  %v3960_v36 = vmov 0.0  }
  0x91   : > { %3415 = vmatpush3.bf16.msra.mxu1 %v3412_v37  ;;  %3385 = vmatprep.subr.bf16.mxu0 %v3384_v43  ;;  %1291 = vst [vmem:[#allocation2] sm:$0x1] %v3960_v36  ;;  %1292 = vst [vmem:[#allocation2 + $0x21] sm:$0x1] %v3960_v36  ;;  %v2714_v37 = vld [vmem:[%s4760_s5 + $0x100] sm:$0xff] }
  0x92   : > { %3417 = vmatprep.subr.bf16.mxu1 %v3416_v44  ;;  %v4332_v39 = vpack.c.bf16 %v2715_v38, %v2714_v37 }
  0x94   : > { %3387 = vmatpush3.bf16.msra.mxu0 %v3384_v43  ;;  %v968_v43 = vunpack.c.0.s8 %v967_v41 }
  0x95   : > { %3419 = vmatpush3.bf16.msra.mxu1 %v3416_v44  ;;  %3389 = vmatprep.subr.bf16.mxu0 %v3388_v49  ;;  %v970_v44 = vshrl.u32 %v969_v42, 7 }
  0x96   : > { %3421 = vmatprep.subr.bf16.mxu1 %v3420_v50 }
  0x97   : > { %v4339_v48 = vsub.s32 %v968_v43, %v970_v44  ;;  %v4342_v59 = vsub.s32 0, %v970_v44 }
  0x98   : > { %3391 = vmatpush3.bf16.msra.mxu0 %v3388_v49 }
  0x99   : > { %3423 = vmatpush3.bf16.msra.mxu1 %v3420_v50  ;;  %3457 = vmatprep.subr.bf16.mxu0 %v3456_v55  ;;  %v1313_v50 = vunpack.c.0.s8 %v1312_v46 }
  0x9a   : > { %3425 = vmatprep.subr.bf16.mxu1 %v3424_v56 }
  0x9b   : > { %3016 = vmatmul.mubr.msk.f32.vlgmr.msra.gmra.mrb[0].mxu0 %vm621_vm0, %v602_v57  ;;  %v4345_v62 = vsub.s32 %v1313_v50, %v970_v44 }
  0x9c   : > { %3054 = vmatmul.mubr.msk.f32.vlgmr.msra.gmra.mrb[0].mxu1 %vm621_vm0, %v602_v57  ;;  %3459 = vmatpush3.bf16.msra.mxu0 %v3456_v55 }
  0x9d   : > { %3427 = vmatpush3.bf16.msra.mxu1 %v3424_v56  ;;  %3461 = vmatprep.subr.bf16.mxu0 %v3460_v2 }
  0x9e   : > { %3429 = vmatprep.subr.bf16.mxu1 %v3428_v60 }
  0xa0   : > { %3463 = vmatpush3.bf16.msra.mxu0 %v3460_v2 }
  0xa1   : > { %3431 = vmatpush3.bf16.msra.mxu1 %v3428_v60  ;;  %3465 = vmatprep.subr.bf16.mxu0 %v3464_v8 }
  0xa2   : > { %3433 = vmatprep.subr.bf16.mxu1 %v3432_v63 }
  0xa4   : > { %3467 = vmatpush3.bf16.msra.mxu0 %v3464_v8 }
  0xa5   : > { %3435 = vmatpush3.bf16.msra.mxu1 %v3432_v63  ;;  %3469 = vmatprep.subr.bf16.mxu0 %v3468_v14 }
  0xa6   : > { %3437 = vmatprep.subr.bf16.mxu1 %v3436_v5 }
  0xa8   : > { %3471 = vmatpush3.bf16.msra.mxu0 %v3468_v14 }
  0xa9   : > { %3439 = vmatpush3.bf16.msra.mxu1 %v3436_v5  ;;  %3473 = vmatprep.subr.bf16.mxu0 %v3472_v20 }
  0xaa   : > { %3441 = vmatprep.subr.bf16.mxu1 %v3440_v11 }
  0xac   : > { %3475 = vmatpush3.bf16.msra.mxu0 %v3472_v20 }
  0xad   : > { %3443 = vmatpush3.bf16.msra.mxu1 %v3440_v11  ;;  %3477 = vmatprep.subr.bf16.mxu0 %v3476_v26 }
  0xae   : > { %3445 = vmatprep.subr.bf16.mxu1 %v3444_v17 }
  0xb0   : > { %3479 = vmatpush3.bf16.msra.mxu0 %v3476_v26 }
  0xb1   : > { %3447 = vmatpush3.bf16.msra.mxu1 %v3444_v17  ;;  %3481 = vmatprep.subr.bf16.mxu0 %v3480_v32 }
  0xb2   : > { %3449 = vmatprep.subr.bf16.mxu1 %v3448_v23 }
  0xb4   : > { %3483 = vmatpush3.bf16.msra.mxu0 %v3480_v32 }
  0xb5   : > { %3451 = vmatpush3.bf16.msra.mxu1 %v3448_v23  ;;  %3485 = vmatprep.subr.bf16.mxu0 %v3484_v35 }
  0xb6   : > { %3453 = vmatprep.subr.bf16.mxu1 %v3452_v29 }
  0xb8   : > { %3487 = vmatpush3.bf16.msra.mxu0 %v3484_v35 }
  0xb9   : > { %3455 = vmatpush3.bf16.msra.mxu1 %v3452_v29  ;;  %3489 = vmatprep.subr.bf16.mxu0 %v4332_v39 }
 0x16e   : > { %v3017_v49 = vpop.f32.mrb[0].mxu0 }
 0x16f   : > { %v792_v51 = vadd.f32 %v3017_v49, %v2693_v47  ;;  %v3055_v52 = vpop.f32.mrb[0].mxu1  ;;  %v775_v53 = vpop.f32.mrb[1].mxu0 }
 0x170   : > { %v962_v54 = vadd.f32 %v3055_v52, %v2693_v47  ;;  %v791_v55 = vadd.f32 %v2693_v47, %v775_v53  ;;  %v952_v56 = vpop.f32.mrb[1].mxu1 }
 0x171   : > { %v1014_v57 = vcombine.high %v792_v51, %v792_v51  ;;  %v1021_v58 = vrot.slane %v792_v51, %v4339_v48  ;;  %v961_v3 = vadd.f32 %v2693_v47, %v952_v56 }
 0x172   : > { %v1130_v60 = vcombine.high %v962_v54, %v962_v54  ;;  %v1137_v61 = vrot.slane %v962_v54, %v4339_v48  ;;  %v965_v63 = vcombine.high %v791_v55, %v791_v55  ;;  %v972_v7 = vrot.slane %v791_v55, %v4339_v48 }
 0x173   : > { %v1028_v0 = vrot.slane %v1014_v57, %v4339_v48  ;;  %v1029_v1 = vcombine.high %v1021_v58, %v1021_v58  ;;  %v1037_v2 = vrot.slane %v1021_v58, %v4339_v48  ;;  %v1081_v45 = vcombine.high %v961_v3, %v961_v3 }
 0x174   : > { %v1144_v4 = vrot.slane %v1130_v60, %v4339_v48  ;;  %v1145_v5 = vcombine.high %v1137_v61, %v1137_v61  ;;  %v1153_v6 = vrot.slane %v1137_v61, %v4339_v48  ;;  %v979_v11 = vrot.slane %v965_v63, %v4339_v48 }
 0x175   : > { %v1030_v8 = vcombine.high %v1028_v0, %v1028_v0  ;;  %v1044_v9 = vrot.slane %v1028_v0, %v4339_v48  ;;  %v1051_v10 = vrot.slane %v1029_v1, %v4339_v48  ;;  %v1059_v17 = vcombine.high %v1037_v2, %v1037_v2 }
 0x176   : > { %v1146_v12 = vcombine.high %v1144_v4, %v1144_v4  ;;  %v1160_v13 = vrot.slane %v1144_v4, %v4339_v48  ;;  %v1167_v14 = vrot.slane %v1145_v5, %v4339_v48  ;;  %v1175_v15 = vcombine.high %v1153_v6, %v1153_v6 }
 0x177   : > { %v1058_v16 = vrot.slane %v1030_v8, %v4339_v48  ;;  %v1060_v18 = vcombine.high %v1044_v9, %v1044_v9  ;;  %v1214_v19 = vrot.slane %v1153_v6, %v4342_v59  ;;  %v1061_v24 = vcombine.high %v1051_v10, %v1051_v10 }
 0x178   : > { %v1174_v20 = vrot.slane %v1146_v12, %v4339_v48  ;;  %v1176_v21 = vcombine.high %v1160_v13, %v1160_v13  ;;  %v1177_v22 = vcombine.high %v1167_v14, %v1167_v14  ;;  %v1218_v23 = vrot.slane %v1167_v14, %v4342_v59 }
 0x179   : > { %v1222_v25 = vrot.slane %v1175_v15, %v4342_v59  ;;  %v1230_v26 = vrot.slane %v1160_v13, %v4342_v59  ;;  %v1268_v27 = vsel %vm1259_vm1, %v1037_v2, %v1214_v19  ;;  %v1062_v32 = vcombine.high %v1058_v16, %v1058_v16 }
 0x17a   : > { %v1178_v28 = vcombine.high %v1174_v20, %v1174_v20  ;;  %v1226_v29 = vrot.slane %v1177_v22, %v4342_v59  ;;  %v1234_v30 = vrot.slane %v1174_v20, %v4342_v59  ;;  %v1238_v31 = vrot.slane %v1176_v21, %v4342_v59 }
 0x17b   : > { %v1269_v33 = vsel %vm1259_vm1, %v1051_v10, %v1218_v23  ;;  %v1270_v34 = vsel %vm1259_vm1, %v1059_v17, %v1222_v25  ;;  %v1272_v35 = vsel %vm1259_vm1, %v1044_v9, %v1230_v26  ;;  %v980_v47 = vcombine.high %v972_v7, %v972_v7 }
 0x17c   : > { %v1242_v36 = vrot.slane %v1178_v28, %v4342_v59  ;;  %v1271_v37 = vsel %vm1259_vm1, %v1061_v24, %v1226_v29  ;;  %v1273_v38 = vsel %vm1259_vm1, %v1058_v16, %v1234_v30  ;;  %v1274_v40 = vsel %vm1259_vm1, %v1060_v18, %v1238_v31 }
 0x17d   : > { %v1343_v41 = vcombine.low %v1268_v27, %v1269_v33  ;;  %v1344_v43 = vcombine.low %v1270_v34, %v1271_v37  ;;  %v1360_v44 = vcombine.low %v1272_v35, %v1273_v38  ;;  %v981_v49 = vcombine.high %v979_v11, %v979_v11 }
 0x17e   : > { %v1275_v46 = vsel %vm1259_vm1, %v1062_v32, %v1242_v36  ;;  %v988_v54 = vrot.slane %v972_v7, %v4339_v48  ;;  %v995_v55 = vrot.slane %v979_v11, %v4339_v48  ;;  %v1088_v58 = vrot.slane %v961_v3, %v4339_v48 }
 0x17f   : > { %v1351_v50 = vrot.slane %v1343_v41, %v4345_v62  ;;  %v1358_v51 = vrot.slane %v1344_v43, %v4345_v62  ;;  %v1361_v52 = vcombine.low %v1274_v40, %v1275_v46  ;;  %v1368_v53 = vrot.slane %v1360_v44, %v4345_v62  ;;  %v2716_v41 = vld [vmem:[%s4760_s5 + $0x110] sm:$0xff] }
 0x180   : > { %v1095_v60 = vrot.slane %v1081_v45, %v4339_v48  ;;  %v1002_v61 = vrot.slane %v980_v47, %v4339_v48  ;;  %v1009_v63 = vrot.slane %v981_v49, %v4339_v48  ;;  %v1096_v1 = vcombine.high %v1088_v58, %v1088_v58  ;;  %v2718_v47 = vld [vmem:[%s4760_s5 + $0x120] sm:$0xff]  ;;  %v2719_v49 = vld [vmem:[%s4760_s5 + $0x128] sm:$0xff] }
 0x181   : > { %v4380_v56 = vcombine.low %v1351_v50, %v1358_v51  ;;  %v1375_v57 = vrot.slane %v1361_v52, %v4345_v62  ;;  %v1104_v4 = vrot.slane %v1088_v58, %v4339_v48  ;;  %v1010_v5 = vcombine.high %v988_v54, %v988_v54  ;;  %v2720_v52 = vld [vmem:[%s4760_s5 + $0x130] sm:$0xff] }
 0x182   : > { %v1097_v2 = vcombine.high %v1095_v60, %v1095_v60  ;;  %v1011_v6 = vcombine.high %v995_v55, %v995_v55  ;;  %v1111_v7 = vrot.slane %v1095_v60, %v4339_v48  ;;  %v1118_v3 = vrot.slane %v1096_v1, %v4339_v48  ;;  %v2724_v60 = vld [vmem:[%s4760_s5 + $0x150] sm:$0xff]  ;;  %v2726_v1 = vld [vmem:[%s4760_s5 + $0x160] sm:$0xff] }
 0x183   : > { %v4387_v0 = vcombine.low %v1368_v53, %v1375_v57  ;;  %1383 = vst [vmem:[#allocation2 + $0x11] sm:$0xff] %v4380_v56  ;;  %v1126_v9 = vcombine.high %v1104_v4, %v1104_v4  ;;  %v1182_v10 = vrot.slane %v1104_v4, %v4342_v59  ;;  %v1012_v11 = vcombine.high %v1002_v61, %v1002_v61  ;;  %v2721_v53 = vld [vmem:[%s4760_s5 + $0x138] sm:$0xff]  ;;  %v2723_v57 = vld [vmem:[%s4760_s5 + $0x148] sm:$0xff] }
 0x184   : > { %v1125_v8 = vrot.slane %v1097_v2, %v4339_v48  ;;  %v1013_v12 = vcombine.high %v1009_v63, %v1009_v63  ;;  %v1127_v13 = vcombine.high %v1111_v7, %v1111_v7  ;;  %v1198_v14 = vrot.slane %v1111_v7, %v4342_v59  ;;  %v2727_v2 = vld [vmem:[%s4760_s5 + $0x168] sm:$0xff] }
 0x185   : > { %1384 = vst [vmem:[#allocation2 + $0x19] sm:$0xff] %v4387_v0  ;;  %v1128_v15 = vcombine.high %v1118_v3, %v1118_v3  ;;  %v1186_v17 = vrot.slane %v1118_v3, %v4342_v59  ;;  %v1190_v18 = vrot.slane %v1126_v9, %v4342_v59  ;;  %v1260_v48 = vsel %vm1259_vm1, %v988_v54, %v1182_v10 }
 0x186   : > { %v1129_v16 = vcombine.high %v1125_v8, %v1125_v8  ;;  %v1202_v19 = vrot.slane %v1125_v8, %v4342_v59  ;;  %v1206_v20 = vrot.slane %v1127_v13, %v4342_v59  ;;  %v1264_v21 = vsel %vm1259_vm1, %v995_v55, %v1198_v14 }
 0x187   : > { %v1194_v22 = vrot.slane %v1128_v15, %v4342_v59  ;;  %v1261_v24 = vsel %vm1259_vm1, %v1002_v61, %v1186_v17  ;;  %v1262_v25 = vsel %vm1259_vm1, %v1010_v5, %v1190_v18  ;;  %v3496_v50 = vpack.c.bf16 %v2719_v49, %v2718_v47  ;;  %v2725_v61 = vld [vmem:[%s4760_s5 + $0x158] sm:$0xff]  ;;  %v2728_v5 = vld [vmem:[%s4760_s5 + $0x170] sm:$0xff]  ;;  %v2730_v17 = vld [vmem:[%s4761_s6] ss:$0 sm:$0xff] }
 0x188   : > { %v1210_v23 = vrot.slane %v1129_v16, %v4342_v59  ;;  %v1265_v26 = vsel %vm1259_vm1, %v1009_v63, %v1202_v19  ;;  %v1266_v27 = vsel %vm1259_vm1, %v1011_v6, %v1206_v20  ;;  %v1309_v28 = vcombine.low %v1260_v48, %v1261_v24  ;;  %v2729_v6 = vld [vmem:[%s4760_s5 + $0x178] sm:$0xff] }
 0x189   : > { %v1263_v29 = vsel %vm1259_vm1, %v1012_v11, %v1194_v22  ;;  %v1326_v31 = vcombine.low %v1264_v21, %v1265_v26  ;;  %v3500_v55 = vpack.c.bf16 %v2721_v53, %v2720_v52  ;;  %v3508_v63 = vpack.c.bf16 %v2725_v61, %v2724_v60 }
 0x18a   : > { %v1267_v30 = vsel %vm1259_vm1, %v1013_v12, %v1210_v23  ;;  %v1310_v32 = vcombine.low %v1262_v25, %v1263_v29  ;;  %v1317_v34 = vrot.slane %v1309_v28, %v4345_v62  ;;  %v3512_v4 = vpack.c.bf16 %v2727_v2, %v2726_v1 }
 0x18b   : > { %v1327_v33 = vcombine.low %v1266_v27, %v1267_v30  ;;  %v1334_v36 = vrot.slane %v1326_v31, %v4345_v62  ;;  %v3516_v7 = vpack.c.bf16 %v2729_v6, %v2728_v5  ;;  %v1277_v14 = vand.u32 127, %v969_v42 }
 0x18c   : > { %v1324_v35 = vrot.slane %v1310_v32, %v4345_v62  ;;  %v1388_v51 = vld [vmem:[#allocation2 + $0x18] sm:$0xff] }
 0x18d   : > { %v1341_v37 = vrot.slane %v1327_v33, %v4345_v62  ;;  %v2717_v62 = vld [vmem:[%s4760_s5 + $0x118] sm:$0xff]  ;;  %v1282_v15 = vand.u32 3, %v1277_v14 }
 0x18e   : > { %v4415_v38 = vcombine.low %v1317_v34, %v1324_v35  ;;  %v3492_v46 = vpack.c.bf16 %v2717_v62, %v2716_v41  ;;  %v1598_v8 = vld [vmem:[#allocation2 + $0x12] sm:$0xff]  ;;  %v1599_v9 = vld [vmem:[#allocation2 + $0x1a] sm:$0xff] }
 0x18f   : > { %v4417_v40 = vcombine.low %v1334_v36, %v1341_v37  ;;  %vm4474_vm2 = vcmp.lt.s32.totalorder %v1282_v15, 2 }
 0x190   : > { %1381 = vst [vmem:[#allocation2 + $0x1] sm:$0xff] %v4415_v38  ;;  %3088 = vmatprep.mubr.f32.mxu1 %v4415_v38 }
 0x191   : > { %1382 = vst [vmem:[#allocation2 + $0x9] sm:$0xff] %v4417_v40  ;;  %3089 = vmatmul.mubr.f32.vlgmr.msra.gmra.mrb[2].mxu1 %v4417_v40 }
 0x192   : > { %3091 = vmatprep.mubr.f32.mxu1 %v4380_v56 }
 0x195   : > { %3092 = vmatmul.mubr.f32.gmra.mrb[4].mxu1 %v4387_v0 }
 0x197   : > { %v1385_v43 = vld [vmem:[#allocation2] sm:$0xff] }
 0x198   : > { %v1386_v44 = vld [vmem:[#allocation2 + $0x8] sm:$0xff]  ;;  %v1387_v45 = vld [vmem:[#allocation2 + $0x10] sm:$0xff]  ;;  %3126 = vmatprep.mubr.f32.mxu0 %v1385_v43 }
 0x199   : > { %3127 = vmatmul.mubr.f32.vlgmr.msra.gmra.mrb[2].mxu0 %v1386_v44  ;;  %v1596_v54 = vld [vmem:[#allocation2 + $0x2] sm:$0xff]  ;;  %v1597_v3 = vld [vmem:[#allocation2 + $0xa] sm:$0xff] }
 0x19a   : > { %3491 = vmatpush3.bf16.msra.mxu0 %v4332_v39  ;;  %3129 = vmatprep.mubr.f32.mxu0 %v1387_v45  ;;  %v2722_v39 = vld [vmem:[%s4760_s5 + $0x140] sm:$0xff] }
 0x19b   : > { %3493 = vmatprep.subr.bf16.mxu0 %v3492_v46  ;;  %v3504_v58 = vpack.c.bf16 %v2723_v57, %v2722_v39 }
 0x19d   : > { %3130 = vmatmul.mubr.f32.gmra.mrb[4].mxu0 %v1388_v51 }
 0x19e   : > { %3495 = vmatpush3.bf16.msra.mxu0 %v3492_v46  ;;  %3164 = vmatprep.mubr.f32.mxu0 %v1596_v54 }
 0x19f   : > { %3497 = vmatprep.subr.bf16.mxu0 %v3496_v50 }
 0x1a2   : > { %3499 = vmatpush3.bf16.msra.mxu0 %v3496_v50 }
 0x1a3   : > { %3501 = vmatprep.subr.bf16.mxu0 %v3500_v55 }
 0x1a6   : > { %3503 = vmatpush3.bf16.msra.mxu0 %v3500_v55 }
 0x1a7   : > { %3505 = vmatprep.subr.bf16.mxu0 %v3504_v58 }
 0x1aa   : > { %3507 = vmatpush3.bf16.msra.mxu0 %v3504_v58 }
 0x1ab   : > { %3509 = vmatprep.subr.bf16.mxu0 %v3508_v63 }
 0x1ae   : > { %3511 = vmatpush3.bf16.msra.mxu0 %v3508_v63 }
 0x1af   : > { %3513 = vmatprep.subr.bf16.mxu0 %v3512_v4 }
 0x1b2   : > { %3515 = vmatpush3.bf16.msra.mxu0 %v3512_v4 }
 0x1b3   : > { %3517 = vmatprep.subr.bf16.mxu0 %v3516_v7 }
 0x1b6   : > { %3519 = vmatpush3.bf16.msra.mxu0 %v3516_v7 }
 0x1b9   : > { %3165 = vmatmul.mubr.f32.vlgmr.msra.gmra.mrb[2].mxu0 %v1597_v3 }
 0x1ba   : > { %3167 = vmatprep.mubr.f32.mxu0 %v1598_v8 }
 0x1bd   : > { %3168 = vmatmul.mubr.f32.gmra.mrb[4].mxu0 %v1599_v9 }
 0x264   : > { %v3090_v10 = vpop.f32.mrb[2].mxu1 }
 0x265   : > { %v1492_v11 = vpop.f32.mrb[3].mxu1 }
 0x268   : > { %v3093_v12 = vpop.f32.mrb[4].mxu1 }
 0x269   : > { %v1502_v13 = vpop.f32.mrb[5].mxu1 }
 0x28c   : > { %v3166_v16 = vpop.f32.mrb[2].mxu0 }
 0x28d   : > { %v3680_v18 = vadd.f32 %v3166_v16, %v3090_v10  ;;  %v1683_v19 = vpop.f32.mrb[3].mxu0 }
 0x28e   : > { %v3681_v20 = vadd.f32 %v1683_v19, %v1492_v11 }
 0x28f   : > { %v4472_v48 = vadd.f32 %v3680_v18, %v2730_v17 }
 0x290   : > { %v4478_v22 = vadd.f32 %v3681_v20, %v2730_v17  ;;  %v3169_v23 = vpop.f32.mrb[4].mxu0 }
 0x291   : > { %v3682_v24 = vadd.f32 %v3169_v23, %v3093_v12  ;;  %v1693_v42 = vpop.f32.mrb[5].mxu0  ;;  %v1718_v25 = vmul.f32 %v4472_v48, %v4472_v48  ;;  %v1748_v28 = vsel %vm4474_vm2, %v4472_v48, 0.0 }
 0x292   : > { %v3683_v26 = vadd.f32 %v1693_v42, %v1502_v13  ;;  %v1747_v27 = vsel %vm4474_vm2, %v4478_v22, 0.0  ;;  %v1717_v29 = vmul.f32 %v4478_v22, %v4478_v22  ;;  %v1721_v32 = vadd.f32 %v4472_v48, %v4478_v22  ;;  %v2736_v42 = vld [vmem:[%s4764_s9 + $0x80] sm:$0xff] }
 0x293   : > { %v4490_v30 = vadd.f32 %v3682_v24, %v2730_v17  ;;  %v1764_v34 = vsel %vm4474_vm2, %v1718_v25, 0.0  ;;  %v1751_v35 = vadd.f32 %v1748_v28, %v1747_v27  ;;  %v2738_v27 = vld [vmem:[%s4764_s9 + $0x90] sm:$0xff]  ;;  %v2739_v28 = vld [vmem:[%s4764_s9 + $0x98] sm:$0xff] }
 0x294   : > { %v4492_v31 = vadd.f32 %v3683_v26, %v2730_v17  ;;  %v1763_v33 = vsel %vm4474_vm2, %v1717_v29, 0.0  ;;  %v1733_v62 = vadd.f32 %v1718_v25, %v1717_v29  ;;  %v2737_v25 = vld [vmem:[%s4764_s9 + $0x88] sm:$0xff]  ;;  %v3524_v29 = vpack.c.bf16 %v2739_v28, %v2738_v27 }
 0x295   : > { %v1750_v43 = vsel %vm4474_vm2, %v4490_v30, 0.0  ;;  %v1767_v45 = vadd.f32 %v1764_v34, %v1763_v33  ;;  %v1720_v47 = vmul.f32 %v4490_v30, %v4490_v30  ;;  %v3520_v26 = vpack.c.bf16 %v2737_v25, %v2736_v42  ;;  %v2741_v33 = vld [vmem:[%s4764_s9 + $0xa8] sm:$0xff] }
 0x296   : > { %v1722_v36 = vadd.f32 %v1721_v32, %v4492_v31  ;;  %v1749_v37 = vsel %vm4474_vm2, %v4492_v31, 0.0  ;;  %v1719_v41 = vmul.f32 %v4492_v31, %v4492_v31  ;;  %v2740_v32 = vld [vmem:[%s4764_s9 + $0xa0] sm:$0xff] }
 0x297   : > { %v1752_v44 = vadd.f32 %v1751_v35, %v1749_v37  ;;  %v1766_v54 = vsel %vm4474_vm2, %v1720_v47, 0.0  ;;  %3521 = vmatprep.subr.bf16.mxu1 %v3520_v26  ;;  %v3528_v34 = vpack.c.bf16 %v2741_v33, %v2740_v32  ;;  %v2742_v35 = vld [vmem:[%s4764_s9 + $0xb0] sm:$0xff] }
 0x298   : > { %v1723_v46 = vadd.f32 %v1722_v36, %v4490_v30  ;;  %v1734_v49 = vadd.f32 %v1733_v62, %v1719_v41  ;;  %v1765_v50 = vsel %vm4474_vm2, %v1719_v41, 0.0  ;;  %3523 = vmatpush3.bf16.msra.mxu1 %v3520_v26  ;;  %v2743_v36 = vld [vmem:[%s4764_s9 + $0xb8] sm:$0xff]  ;;  %v2744_v41 = vld [vmem:[%s4764_s9 + $0xc0] sm:$0xff]  ;;  %v2745_v62 = vld [vmem:[%s4764_s9 + $0xc8] sm:$0xff] }
 0x299   : > { %v1753_v51 = vadd.f32 %v1752_v44, %v1750_v43  ;;  %v1768_v52 = vadd.f32 %v1767_v45, %v1765_v50  ;;  %3525 = vmatprep.subr.bf16.mxu1 %v3524_v29  ;;  %v3532_v37 = vpack.c.bf16 %v2743_v36, %v2742_v35  ;;  %v3536_v43 = vpack.c.bf16 %v2745_v62, %v2744_v41  ;;  %v2746_v44 = vld [vmem:[%s4764_s9 + $0xd0] sm:$0xff]  ;;  %v2747_v45 = vld [vmem:[%s4764_s9 + $0xd8] sm:$0xff] }
 0x29a   : > { %1724 = vadd.xlane.f32.xlu0 %v1723_v46  ;;  %v1735_v53 = vadd.f32 %v1734_v49, %v1720_v47  ;;  %v3540_v46 = vpack.c.bf16 %v2747_v45, %v2746_v44  ;;  %v2748_v47 = vld [vmem:[%s4764_s9 + $0xe0] sm:$0xff]  ;;  %v2749_v49 = vld [vmem:[%s4764_s9 + $0xe8] sm:$0xff]  ;;  %v1874_v33 = vld [vmem:[%s4764_s9 + $0x10] sm:$0xff] }
 0x29b   : > { %1754 = vadd.xlane.f32.xlu1 %v1753_v51  ;;  %v1769_v55 = vadd.f32 %v1768_v52, %v1766_v54  ;;  %v3544_v50 = vpack.c.bf16 %v2749_v49, %v2748_v47  ;;  %v2750_v51 = vld [vmem:[%s4764_s9 + $0xf0] sm:$0xff]  ;;  %v2751_v52 = vld [vmem:[%s4764_s9 + $0xf8] sm:$0xff]  ;;  %v1872_v54 = vld [vmem:[%s4764_s9] sm:$0xff] }
 0x29c   : > { %3527 = vmatpush3.bf16.msra.mxu1 %v3524_v29  ;;  %v1877_v47 = vld [vmem:[%s4764_s9 + $0x28] sm:$0xff] }
 0x29d   : > { %3529 = vmatprep.subr.bf16.mxu1 %v3528_v34 }
 0x29e   : > { %1736 = vadd.xlane.f32.xlu0 %v1735_v53  ;;  %v3548_v53 = vpack.c.bf16 %v2751_v52, %v2750_v51  ;;  %v1878_v51 = vld [vmem:[%s4764_s9 + $0x30] sm:$0xff]  ;;  %v1879_v52 = vld [vmem:[%s4764_s9 + $0x38] sm:$0xff] }
 0x29f   : > { %1770 = vadd.xlane.f32.xlu1 %v1769_v55  ;;  %v1873_v55 = vld [vmem:[%s4764_s9 + $0x8] sm:$0xff] }
 0x2a0   : > { %3531 = vmatpush3.bf16.msra.mxu1 %v3528_v34  ;;  %v1875_v34 = vld [vmem:[%s4764_s9 + $0x18] sm:$0xff] }
 0x2a1   : > { %3533 = vmatprep.subr.bf16.mxu1 %v3532_v37 }
 0x2a4   : > { %3535 = vmatpush3.bf16.msra.mxu1 %v3532_v37 }
 0x2a5   : > { %3537 = vmatprep.subr.bf16.mxu1 %v3536_v43 }
 0x2a8   : > { %3539 = vmatpush3.bf16.msra.mxu1 %v3536_v43  ;;  %v3556_v43 = vpack.c.bf16 %v1875_v34, %v1874_v33 }
 0x2a9   : > { %3541 = vmatprep.subr.bf16.mxu1 %v3540_v46 }
 0x2ac   : > { %3543 = vmatpush3.bf16.msra.mxu1 %v3540_v46  ;;  %v1876_v46 = vld [vmem:[%s4764_s9 + $0x20] sm:$0xff] }
 0x2ad   : > { %3545 = vmatprep.subr.bf16.mxu1 %v3544_v50 }
 0x2b0   : > { %3547 = vmatpush3.bf16.msra.mxu1 %v3544_v50  ;;  %v3560_v50 = vpack.c.bf16 %v1877_v47, %v1876_v46 }
 0x2b1   : > { %3549 = vmatprep.subr.bf16.mxu1 %v3548_v53 }
 0x2b4   : > { %3551 = vmatpush3.bf16.msra.mxu1 %v3548_v53 }
 0x327   : > { %v1725_v39 = vpop.xlane.xlu0 %1724 }
 0x328   : > { %v1726_v57 = vrot.slane %v1725_v39, 4  ;;  %v1755_v58 = vpop.xlane.xlu1 %1754 }
 0x329   : > { %v1756_v60 = vrot.slane %v1755_v58, 4 }
 0x32a   : > { %v1727_v61 = vadd.f32 %v1726_v57, %v1725_v39  ;;  %v4570_v39 = vpack.c.bf16 %v1873_v55, %v1872_v54  ;;  %v3564_v54 = vpack.c.bf16 %v1879_v52, %v1878_v51  ;;  %v1880_v55 = vld [vmem:[%s4764_s9 + $0x40] sm:$0xff] }
 0x32b   : > { %v1757_v63 = vadd.f32 %v1756_v60, %v1755_v58  ;;  %v1737_v1 = vpop.xlane.xlu0 %1736 }
 0x32c   : > { %v1728_v2 = vrot.slane %v1727_v61, 2  ;;  %v1738_v4 = vrot.slane %v1737_v1, 4  ;;  %v1771_v5 = vpop.xlane.xlu1 %1770  ;;  %3553 = vmatprep.subr.bf16.mxu1 %v4570_v39 }
 0x32d   : > { %v1758_v6 = vrot.slane %v1757_v63, 2  ;;  %v1772_v7 = vrot.slane %v1771_v5, 4 }
 0x32e   : > { %v1739_v3 = vadd.f32 %v1738_v4, %v1737_v1  ;;  %v1729_v8 = vadd.f32 %v1728_v2, %v1727_v61  ;;  %v1815_v4 = vld [vmem:[%s4762_s7] sm:$0x1] }
 0x32f   : > { %v1773_v9 = vadd.f32 %v1772_v7, %v1771_v5  ;;  %v1759_v10 = vadd.f32 %v1758_v6, %v1757_v63 }
 0x330   : > { %v1740_v11 = vrot.slane %v1739_v3, 2  ;;  %v1730_v12 = vrot.slane %v1729_v8, 1 }
 0x331   : > { %v1774_v13 = vrot.slane %v1773_v9, 2  ;;  %v1760_v16 = vrot.slane %v1759_v10, 1 }
 0x332   : > { %v1731_v14 = vadd.f32 %v1730_v12, %v1729_v8  ;;  %v1741_v15 = vadd.f32 %v1740_v11, %v1739_v3 }
 0x333   : > { %v1775_v17 = vadd.f32 %v1774_v13, %v1773_v9  ;;  %v1761_v23 = vadd.f32 %v1760_v16, %v1759_v10  ;;  %v2731_v13 = vld [vmem:[%s4763_s8] ss:$0 sm:$0xff] }
 0x334   : > { %3704 = vpush %v1731_v14  ;;  %v1742_v18 = vrot.slane %v1741_v15, 1 }
 0x335   : > { %v1776_v19 = vrot.slane %v1775_v17, 1 }
 0x336   : > { %v1743_v20 = vadd.f32 %v1742_v18, %v1741_v15 }
 0x337   : > { %v1777_v24 = vadd.f32 %v1776_v19, %v1775_v17 }
 0x338   : > { %3706 = vpush %v1743_v20 }
 0x339   : > { %3708 = vpush %v1761_v23 }
 0x33a   : > { %3710 = vpush %v1777_v24 }
 0x365   : > { %s3705_s21 = spop %3704 }
 0x369   : > { %s3707_s23 = spop %3706 }
 0x36a   : > { %s3709_s28 = spop %3708 }
 0x36b   : > { %s1779_s17 = ssub.f32 %s3705_s21, %s3709_s28  ;;  %s1783_s19 = smul.f32 0.00048828125, %s3709_s28 }
 0x36c   : > { %s3711_s20 = spop %3710 }
 0x36d   : > { %s1786_s25 = smul.f32 0.00048828125, %s1779_s17  ;;  %s1780_s11 = ssub.f32 %s3707_s23, %s3711_s20  ;;  %v1805_v57 = vstv %s1783_s19 }
 0x36e   : > { %s1790_s12 = smul.f32 %s1783_s19, %s1783_s19 }
 0x36f   : > { %s1799_s15 = smul.f32 %s1786_s25, %s1786_s25  ;;  %v1806_v58 = vstv %s1786_s25 }
 0x370   : > { %v1807_v60 = vsel %vm4474_vm2, %v1805_v57, %v1806_v58  ;;  %s1789_s16 = smul.f32 0.00048828125, %s3711_s20  ;;  %v1882_v58 = vld [vmem:[%s4764_s9 + $0x50] sm:$0xff] }
 0x371   : > { %s1798_s24 = smul.f32 0.00048828125, %s1780_s11  ;;  %v1811_v8 = vsub.f32 %v4478_v22, %v1807_v60  ;;  %v1812_v9 = vsub.f32 %v4472_v48, %v1807_v60  ;;  %v1813_v10 = vsub.f32 %v4492_v31, %v1807_v60  ;;  %v1814_v11 = vsub.f32 %v4490_v30, %v1807_v60  ;;  %v1883_v60 = vld [vmem:[%s4764_s9 + $0x58] sm:$0xff] }
 0x372   : > { %s1791_s26 = ssub.f32 %s1789_s16, %s1790_s12 }
 0x373   : > { %s1800_s29 = ssub.f32 %s1798_s24, %s1799_s15 }
 0x374   : > { %s1792_s0 = sadd.f32 1e-05, %s1791_s26 }
 0x375   : > { %s1801_s18 = sadd.f32 1e-05, %s1800_s29 }
 0x376   : > { %v1793_v61 = vstv %s1792_s0 }
 0x377   : > { %3782 = vrsqrt.f32 %v1793_v61  ;;  %v1802_v63 = vstv %s1801_s18  ;;  %v3572_v61 = vpack.c.bf16 %v1883_v60, %v1882_v58 }
 0x378   : > { %3784 = vrsqrt.f32 %v1802_v63  ;;  %v1884_v63 = vld [vmem:[%s4764_s9 + $0x60] sm:$0xff] }
 0x381   : > { %v3783_v1 = vpop.eup %3782 }
 0x382   : > { %v3785_v2 = vpop.eup %3784  ;;  %3712 = vpush %v3783_v1  ;;  %v1885_v1 = vld [vmem:[%s4764_s9 + $0x68] sm:$0xff] }
 0x383   : > { %3714 = vpush %v3785_v2  ;;  %v3576_v2 = vpack.c.bf16 %v1885_v1, %v1884_v63 }
 0x3b3   : > { %s3713_s30 = spop %3712 }
 0x3b4   : > { %s3715_s27 = spop %3714  ;;  %v1808_v5 = vstv %s3713_s30 }
 0x3b5   : > { %v1809_v6 = vstv %s3715_s27 }
 0x3b6   : > { %v1810_v7 = vsel %vm4474_vm2, %v1808_v5, %v1809_v6  ;;  %v1887_v5 = vld [vmem:[%s4764_s9 + $0x78] sm:$0xff] }
 0x3b7   : > { %v1816_v3 = vmul.f32 %v1815_v4, %v1810_v7  ;;  %v1886_v4 = vld [vmem:[%s4764_s9 + $0x70] sm:$0xff]  ;;  %v2752_v7 = vld [vmem:[%s4764_s9 + $0x100] sm:$0xff] }
 0x3b8   : > { %v3580_v6 = vpack.c.bf16 %v1887_v5, %v1886_v4 }
 0x3b9   : > { %v1820_v12 = vrot.slane %v1816_v3, %v4342_v59  ;;  %v2753_v3 = vld [vmem:[%s4764_s9 + $0x108] sm:$0xff] }
 0x3bb   : > { %v1821_v14 = vmul.f32 %v1820_v12, %v1811_v8  ;;  %v1822_v15 = vmul.f32 %v1820_v12, %v1812_v9  ;;  %v1823_v16 = vmul.f32 %v1820_v12, %v1813_v10  ;;  %v1824_v17 = vmul.f32 %v1820_v12, %v1814_v11  ;;  %v2754_v9 = vld [vmem:[%s4764_s9 + $0x110] sm:$0xff]  ;;  %v2755_v10 = vld [vmem:[%s4764_s9 + $0x118] sm:$0xff] }
 0x3bc   : > { %v3584_v8 = vpack.c.bf16 %v2753_v3, %v2752_v7  ;;  %v3588_v11 = vpack.c.bf16 %v2755_v10, %v2754_v9 }
 0x3bd   : > { %v1832_v18 = vadd.f32 %v2731_v13, %v1821_v14  ;;  %v1833_v19 = vadd.f32 %v2731_v13, %v1822_v15  ;;  %v1834_v20 = vadd.f32 %v2731_v13, %v1823_v16  ;;  %v1835_v22 = vadd.f32 %v2731_v13, %v1824_v17  ;;  %v2756_v13 = vld [vmem:[%s4764_s9 + $0x120] sm:$0xff]  ;;  %v2757_v14 = vld [vmem:[%s4764_s9 + $0x128] sm:$0xff] }
 0x3be   : > { %v3592_v16 = vpack.c.bf16 %v2757_v14, %v2756_v13 }
 0x3bf   : > { %v2732_v23 = vmul.f32 -1.442695, %v1832_v18  ;;  %v2733_v48 = vmul.f32 -1.442695, %v1833_v19  ;;  %v2734_v24 = vmul.f32 -1.442695, %v1834_v20 }
 0x3c0   : > { %v2735_v31 = vmul.f32 -1.442695, %v1835_v22 }
 0x3c1   : > { %3786 = vpow2.f32 %v2732_v23  ;;  %v2760_v23 = vld [vmem:[%s4764_s9 + $0x140] sm:$0xff] }
 0x3c2   : > { %3788 = vpow2.f32 %v2733_v48  ;;  %v2761_v48 = vld [vmem:[%s4764_s9 + $0x148] sm:$0xff] }
 0x3c3   : > { %3790 = vpow2.f32 %v2734_v24  ;;  %v3600_v24 = vpack.c.bf16 %v2761_v48, %v2760_v23 }
 0x3c4   : > { %3792 = vpow2.f32 %v2735_v31  ;;  %v2762_v31 = vld [vmem:[%s4764_s9 + $0x150] sm:$0xff] }
 0x3cb   : > { %v3787_v30 = vpop.eup %3786 }
 0x3cc   : > { %v3789_v42 = vpop.eup %3788  ;;  %v1848_v25 = vadd.f32 1.0, %v3787_v30  ;;  %v2763_v30 = vld [vmem:[%s4764_s9 + $0x158] sm:$0xff] }
 0x3cd   : > { %v3791_v26 = vpop.eup %3790  ;;  %v1849_v27 = vadd.f32 1.0, %v3789_v42  ;;  %v3604_v42 = vpack.c.bf16 %v2763_v30, %v2762_v31 }
 0x3ce   : > { %v3793_v28 = vpop.eup %3792  ;;  %v1850_v29 = vadd.f32 1.0, %v3791_v26  ;;  %3794 = vrcp.f32 %v1848_v25  ;;  %v2764_v25 = vld [vmem:[%s4764_s9 + $0x160] sm:$0xff]  ;;  %v2765_v26 = vld [vmem:[%s4764_s9 + $0x168] sm:$0xff] }
 0x3cf   : > { %v1851_v32 = vadd.f32 1.0, %v3793_v28  ;;  %3796 = vrcp.f32 %v1849_v27  ;;  %v3608_v27 = vpack.c.bf16 %v2765_v26, %v2764_v25  ;;  %v2766_v28 = vld [vmem:[%s4764_s9 + $0x170] sm:$0xff] }
 0x3d0   : > { %3798 = vrcp.f32 %v1850_v29  ;;  %v2767_v29 = vld [vmem:[%s4764_s9 + $0x178] sm:$0xff] }
 0x3d1   : > { %3800 = vrcp.f32 %v1851_v32  ;;  %v3612_v32 = vpack.c.bf16 %v2767_v29, %v2766_v28 }
 0x3d8   : > { %v3795_v35 = vpop.eup %3794 }
 0x3d9   : > { %v3797_v36 = vpop.eup %3796  ;;  %v1860_v37 = vmul.f32 %v3795_v35, %v1832_v18  ;;  %v2758_v18 = vld [vmem:[%s4764_s9 + $0x130] sm:$0xff] }
 0x3da   : > { %v3799_v41 = vpop.eup %3798  ;;  %v1861_v62 = vmul.f32 %v3797_v36, %v1833_v19  ;;  %v2759_v19 = vld [vmem:[%s4764_s9 + $0x138] sm:$0xff]  ;;  %v2768_v36 = vld [vmem:[%s4765_s10] ss:$0 sm:$0xff] }
 0x3db   : > { %v3801_v44 = vpop.eup %3800  ;;  %v1862_v45 = vmul.f32 %v3799_v41, %v1834_v20  ;;  %1864 = vst [vmem:[#allocation2 + $0x1] sm:$0xff] %v1860_v37  ;;  %3202 = vmatprep.mubr.f32.mxu1 %v1860_v37 }
 0x3dc   : > { %v1863_v49 = vmul.f32 %v3801_v44, %v1835_v22  ;;  %1865 = vst [vmem:[#allocation2 + $0x9] sm:$0xff] %v1861_v62  ;;  %3203 = vmatmul.mubr.f32.vlgmr.msra.gmra.mrb[6].mxu1 %v1861_v62  ;;  %v3596_v22 = vpack.c.bf16 %v2759_v19, %v2758_v18 }
 0x3dd   : > { %1866 = vst [vmem:[#allocation2 + $0x11] sm:$0xff] %v1862_v45  ;;  %3555 = vmatpush3.bf16.msra.mxu1 %v4570_v39  ;;  %3205 = vmatprep.mubr.f32.mxu1 %v1862_v45  ;;  %v1881_v39 = vld [vmem:[%s4764_s9 + $0x48] sm:$0xff] }
 0x3de   : > { %1867 = vst [vmem:[#allocation2 + $0x19] sm:$0xff] %v1863_v49  ;;  %3557 = vmatprep.subr.bf16.mxu1 %v3556_v43  ;;  %v3568_v57 = vpack.c.bf16 %v1881_v39, %v1880_v55 }
 0x3e0   : > { %3206 = vmatmul.mubr.f32.gmra.mrb[8].mxu1 %v1863_v49 }
 0x3e1   : > { %3559 = vmatpush3.bf16.msra.mxu1 %v3556_v43 }
 0x3e2   : > { %v1868_v53 = vld [vmem:[#allocation2] sm:$0xff]  ;;  %3561 = vmatprep.subr.bf16.mxu1 %v3560_v50 }
 0x3e3   : > { %3240 = vmatprep.mubr.f32.mxu1 %v1868_v53  ;;  %v1869_v12 = vld [vmem:[#allocation2 + $0x8] sm:$0xff] }
 0x3e4   : > { %v1870_v15 = vld [vmem:[#allocation2 + $0x10] sm:$0xff]  ;;  %v2079_v20 = vld [vmem:[#allocation2 + $0x2] sm:$0xff] }
 0x3e5   : > { %3563 = vmatpush3.bf16.msra.mxu1 %v3560_v50  ;;  %v1871_v17 = vld [vmem:[#allocation2 + $0x18] sm:$0xff]  ;;  %v2080_v33 = vld [vmem:[#allocation2 + $0xa] sm:$0xff] }
 0x3e6   : > { %3565 = vmatprep.subr.bf16.mxu1 %v3564_v54  ;;  %v2081_v34 = vld [vmem:[#allocation2 + $0x12] sm:$0xff]  ;;  %v2082_v35 = vld [vmem:[#allocation2 + $0x1a] sm:$0xff] }
 0x3e9   : > { %3567 = vmatpush3.bf16.msra.mxu1 %v3564_v54 }
 0x3ea   : > { %3569 = vmatprep.subr.bf16.mxu1 %v3568_v57 }
 0x3ed   : > { %3571 = vmatpush3.bf16.msra.mxu1 %v3568_v57 }
 0x3ee   : > { %3573 = vmatprep.subr.bf16.mxu1 %v3572_v61 }
 0x3f1   : > { %3575 = vmatpush3.bf16.msra.mxu1 %v3572_v61 }
 0x3f2   : > { %3577 = vmatprep.subr.bf16.mxu1 %v3576_v2 }
 0x3f5   : > { %3579 = vmatpush3.bf16.msra.mxu1 %v3576_v2 }
 0x3f6   : > { %3581 = vmatprep.subr.bf16.mxu1 %v3580_v6 }
 0x3f9   : > { %3583 = vmatpush3.bf16.msra.mxu1 %v3580_v6 }
 0x3fa   : > { %3585 = vmatprep.subr.bf16.mxu1 %v3584_v8 }
 0x3fc   : > { %3241 = vmatmul.mubr.f32.vlgmr.msra.gmra.mrb[6].mxu1 %v1869_v12 }
 0x3fd   : > { %3243 = vmatprep.mubr.f32.mxu1 %v1870_v15  ;;  %3587 = vmatpush3.bf16.msra.mxu1 %v3584_v8 }
 0x3fe   : > { %3589 = vmatprep.subr.bf16.mxu1 %v3588_v11 }
 0x400   : > { %3244 = vmatmul.mubr.f32.gmra.mrb[8].mxu1 %v1871_v17 }
 0x401   : > { %3591 = vmatpush3.bf16.msra.mxu1 %v3588_v11  ;;  %3278 = vmatprep.mubr.f32.mxu1 %v2079_v20 }
 0x402   : > { %3593 = vmatprep.subr.bf16.mxu1 %v3592_v16 }
 0x405   : > { %3595 = vmatpush3.bf16.msra.mxu1 %v3592_v16 }
 0x406   : > { %3597 = vmatprep.subr.bf16.mxu1 %v3596_v22 }
 0x409   : > { %3599 = vmatpush3.bf16.msra.mxu1 %v3596_v22 }
 0x40a   : > { %3601 = vmatprep.subr.bf16.mxu1 %v3600_v24 }
 0x40d   : > { %3603 = vmatpush3.bf16.msra.mxu1 %v3600_v24 }
 0x40e   : > { %3605 = vmatprep.subr.bf16.mxu1 %v3604_v42 }
 0x411   : > { %3607 = vmatpush3.bf16.msra.mxu1 %v3604_v42 }
 0x412   : > { %3609 = vmatprep.subr.bf16.mxu1 %v3608_v27 }
 0x415   : > { %3611 = vmatpush3.bf16.msra.mxu1 %v3608_v27 }
 0x416   : > { %3613 = vmatprep.subr.bf16.mxu1 %v3612_v32 }
 0x419   : > { %3615 = vmatpush3.bf16.msra.mxu1 %v3612_v32 }
 0x41c   : > { %3279 = vmatmul.mubr.f32.vlgmr.msra.gmra.mrb[6].mxu1 %v2080_v33 }
 0x41d   : > { %3281 = vmatprep.mubr.f32.mxu1 %v2081_v34 }
 0x420   : > { %3282 = vmatmul.mubr.f32.gmra.mrb[8].mxu1 %v2082_v35 }
 0x4ef   : > { %v3280_v37 = vpop.f32.mrb[6].mxu1 }
 0x4f0   : > { %v4682_v41 = vadd.f32 %v3280_v37, %v2768_v36  ;;  %v2166_v62 = vpop.f32.mrb[7].mxu1 }
 0x4f1   : > { %v4684_v43 = vadd.f32 %v2768_v36, %v2166_v62 }
 0x4f2   : > { %v2201_v44 = vmul.f32 %v4682_v41, %v4682_v41  ;;  %v2229_v49 = vsel %vm4474_vm2, %v4682_v41, 0.0 }
 0x4f3   : > { %v3283_v45 = vpop.f32.mrb[8].mxu1  ;;  %v2200_v46 = vmul.f32 %v4684_v43, %v4684_v43  ;;  %v2228_v47 = vsel %vm4474_vm2, %v4684_v43, 0.0  ;;  %v2204_v53 = vadd.f32 %v4682_v41, %v4684_v43 }
 0x4f4   : > { %v4696_v50 = vadd.f32 %v3283_v45, %v2768_v36  ;;  %v2176_v51 = vpop.f32.mrb[9].mxu1  ;;  %v2245_v55 = vsel %vm4474_vm2, %v2201_v44, 0.0  ;;  %v2232_v39 = vadd.f32 %v2229_v49, %v2228_v47  ;;  %v2362_v45 = vld [vmem:[#allocation8 + $0x8] sm:$0xff]  ;;  %v2363_v47 = vld [vmem:[#allocation8 + $0x10] sm:$0xff]  ;;  %v2364_v49 = vld [vmem:[#allocation8 + $0x18] sm:$0xff] }
 0x4f5   : > { %v4698_v52 = vadd.f32 %v2768_v36, %v2176_v51  ;;  %v2244_v54 = vsel %vm4474_vm2, %v2200_v46, 0.0  ;;  %v2216_v60 = vadd.f32 %v2201_v44, %v2200_v46  ;;  %v2361_v44 = vld [vmem:[#allocation8] sm:$0xff] }
 0x4f6   : > { %v2203_v63 = vmul.f32 %v4696_v50, %v4696_v50  ;;  %v2248_v1 = vadd.f32 %v2245_v55, %v2244_v54  ;;  %v2231_v8 = vsel %vm4474_vm2, %v4696_v50, 0.0  ;;  %v3616_v46 = vpack.c.bf16 %v2362_v45, %v2361_v44  ;;  %v2365_v51 = vld [vmem:[#allocation8 + $0x20] sm:$0xff]  ;;  %v2366_v54 = vld [vmem:[#allocation8 + $0x28] sm:$0xff] }
 0x4f7   : > { %v2205_v57 = vadd.f32 %v2204_v53, %v4698_v52  ;;  %v2202_v58 = vmul.f32 %v4698_v52, %v4698_v52  ;;  %v2230_v61 = vsel %vm4474_vm2, %v4698_v52, 0.0  ;;  %v3620_v53 = vpack.c.bf16 %v2364_v49, %v2363_v47 }
 0x4f8   : > { %v2233_v5 = vadd.f32 %v2232_v39, %v2230_v61  ;;  %v2247_v10 = vsel %vm4474_vm2, %v2203_v63, 0.0  ;;  %3617 = vmatprep.subr.bf16.mxu0 %v3616_v46  ;;  %v3624_v55 = vpack.c.bf16 %v2366_v54, %v2365_v51  ;;  %v2367_v39 = vld [vmem:[#allocation8 + $0x30] sm:$0xff]  ;;  %v2370_v61 = vld [vmem:[#allocation8 + $0x48] sm:$0xff] }
 0x4f9   : > { %v2206_v2 = vadd.f32 %v2205_v57, %v4696_v50  ;;  %v2217_v4 = vadd.f32 %v2216_v60, %v2202_v58  ;;  %v2246_v6 = vsel %vm4474_vm2, %v2202_v58, 0.0  ;;  %3619 = vmatpush3.bf16.msra.mxu0 %v3616_v46  ;;  %v2368_v57 = vld [vmem:[#allocation8 + $0x38] sm:$0xff]  ;;  %v2369_v60 = vld [vmem:[#allocation8 + $0x40] sm:$0xff]  ;;  %v2347_v51 = vld [vmem:[#allocation7 + $0x10] sm:$0xff] }
 0x4fa   : > { %v2249_v3 = vadd.f32 %v2248_v1, %v2246_v6  ;;  %v2234_v9 = vadd.f32 %v2233_v5, %v2231_v8  ;;  %3621 = vmatprep.subr.bf16.mxu0 %v3620_v53  ;;  %v3628_v58 = vpack.c.bf16 %v2368_v57, %v2367_v39  ;;  %v2371_v1 = vld [vmem:[#allocation8 + $0x50] sm:$0xff]  ;;  %v2373_v5 = vld [vmem:[#allocation8 + $0x60] sm:$0xff]  ;;  %v2374_v6 = vld [vmem:[#allocation8 + $0x68] sm:$0xff] }
 0x4fb   : > { %2207 = vadd.xlane.f32.xlu0 %v2206_v2  ;;  %v2218_v7 = vadd.f32 %v2217_v4, %v2203_v63  ;;  %v3632_v63 = vpack.c.bf16 %v2370_v61, %v2369_v60  ;;  %v2372_v2 = vld [vmem:[#allocation8 + $0x58] sm:$0xff] }
 0x4fc   : > { %v2250_v11 = vadd.f32 %v2249_v3, %v2247_v10  ;;  %v3636_v4 = vpack.c.bf16 %v2372_v2, %v2371_v1  ;;  %v2375_v3 = vld [vmem:[#allocation8 + $0x70] sm:$0xff]  ;;  %v2376_v8 = vld [vmem:[#allocation8 + $0x78] sm:$0xff]  ;;  %v2345_v10 = vld [vmem:[#allocation7] sm:$0xff] }
 0x4fd   : > { %2219 = vadd.xlane.f32.xlu1 %v2218_v7  ;;  %3623 = vmatpush3.bf16.msra.mxu0 %v3620_v53  ;;  %v3640_v7 = vpack.c.bf16 %v2374_v6, %v2373_v5  ;;  %v2348_v53 = vld [vmem:[#allocation7 + $0x18] sm:$0xff]  ;;  %v2349_v1 = vld [vmem:[#allocation7 + $0x20] sm:$0xff]  ;;  %v2350_v2 = vld [vmem:[#allocation7 + $0x28] sm:$0xff] }
 0x4fe   : > { %3625 = vmatprep.subr.bf16.mxu0 %v3624_v55  ;;  %v3652_v60 = vpack.c.bf16 %v2348_v53, %v2347_v51  ;;  %v3656_v5 = vpack.c.bf16 %v2350_v2, %v2349_v1  ;;  %v2351_v6 = vld [vmem:[#allocation7 + $0x30] sm:$0xff] }
 0x4ff   : > { %2235 = vadd.xlane.f32.xlu0 %v2234_v9  ;;  %v3644_v9 = vpack.c.bf16 %v2376_v8, %v2375_v3  ;;  %v2353_v8 = vld [vmem:[#allocation7 + $0x40] sm:$0xff] }
 0x501   : > { %2251 = vadd.xlane.f32.xlu1 %v2250_v11  ;;  %3627 = vmatpush3.bf16.msra.mxu0 %v3624_v55  ;;  %v2346_v11 = vld [vmem:[#allocation7 + $0x8] sm:$0xff] }
 0x502   : > { %3629 = vmatprep.subr.bf16.mxu0 %v3628_v58 }
 0x505   : > { %3631 = vmatpush3.bf16.msra.mxu0 %v3628_v58 }
 0x506   : > { %3633 = vmatprep.subr.bf16.mxu0 %v3632_v63 }
 0x509   : > { %3635 = vmatpush3.bf16.msra.mxu0 %v3632_v63 }
 0x50a   : > { %3637 = vmatprep.subr.bf16.mxu0 %v3636_v4 }
 0x50d   : > { %3639 = vmatpush3.bf16.msra.mxu0 %v3636_v4 }
 0x50e   : > { %3641 = vmatprep.subr.bf16.mxu0 %v3640_v7 }
 0x511   : > { %3643 = vmatpush3.bf16.msra.mxu0 %v3640_v7  ;;  %v2352_v7 = vld [vmem:[#allocation7 + $0x38] sm:$0xff] }
 0x512   : > { %3645 = vmatprep.subr.bf16.mxu0 %v3644_v9  ;;  %v3660_v3 = vpack.c.bf16 %v2352_v7, %v2351_v6 }
 0x515   : > { %3647 = vmatpush3.bf16.msra.mxu0 %v3644_v9  ;;  %v2354_v9 = vld [vmem:[#allocation7 + $0x48] sm:$0xff] }
 0x588   : > { %v2208_v12 = vpop.xlane.xlu0 %2207 }
 0x589   : > { %v2209_v13 = vrot.slane %v2208_v12, 4 }
 0x58a   : > { %v2220_v14 = vpop.xlane.xlu1 %2219 }
 0x58b   : > { %v2210_v15 = vadd.f32 %v2209_v13, %v2208_v12  ;;  %v2221_v16 = vrot.slane %v2220_v14, 4  ;;  %v4722_v12 = vpack.c.bf16 %v2346_v11, %v2345_v10  ;;  %v3664_v10 = vpack.c.bf16 %v2354_v9, %v2353_v8  ;;  %v2355_v11 = vld [vmem:[#allocation7 + $0x50] sm:$0xff] }
 0x58c   : > { %v2236_v17 = vpop.xlane.xlu0 %2235 }
 0x58d   : > { %v2211_v18 = vrot.slane %v2210_v15, 2  ;;  %v2222_v19 = vadd.f32 %v2221_v16, %v2220_v14  ;;  %v2237_v20 = vrot.slane %v2236_v17, 4  ;;  %3649 = vmatprep.subr.bf16.mxu0 %v4722_v12 }
 0x58e   : > { %v2252_v22 = vpop.xlane.xlu1 %2251 }
 0x58f   : > { %v2223_v23 = vrot.slane %v2222_v19, 2  ;;  %v2238_v48 = vadd.f32 %v2237_v20, %v2236_v17  ;;  %v2253_v24 = vrot.slane %v2252_v22, 4  ;;  %v2212_v31 = vadd.f32 %v2211_v18, %v2210_v15 }
 0x591   : > { %v2239_v30 = vrot.slane %v2238_v48, 2  ;;  %v2254_v42 = vadd.f32 %v2253_v24, %v2252_v22  ;;  %v2213_v25 = vrot.slane %v2212_v31, 1  ;;  %v2224_v26 = vadd.f32 %v2223_v23, %v2222_v19 }
 0x593   : > { %v2240_v27 = vadd.f32 %v2239_v30, %v2238_v48  ;;  %v2255_v28 = vrot.slane %v2254_v42, 2  ;;  %v2214_v29 = vadd.f32 %v2213_v25, %v2212_v31  ;;  %v2225_v32 = vrot.slane %v2224_v26, 1 }
 0x595   : > { %v2256_v33 = vadd.f32 %v2255_v28, %v2254_v42  ;;  %3716 = vpush %v2214_v29  ;;  %v2226_v34 = vadd.f32 %v2225_v32, %v2224_v26  ;;  %v2241_v35 = vrot.slane %v2240_v27, 1 }
 0x597   : > { %3718 = vpush %v2226_v34  ;;  %v2242_v36 = vadd.f32 %v2241_v35, %v2240_v27  ;;  %v2257_v37 = vrot.slane %v2256_v33, 1 }
 0x599   : > { %3720 = vpush %v2242_v36  ;;  %v2258_v62 = vadd.f32 %v2257_v37, %v2256_v33 }
 0x59b   : > { %3722 = vpush %v2258_v62 }
 0x5c6   : > { %s3717_s26 = spop %3716 }
 0x5c8   : > { %s3719_s29 = spop %3718 }
 0x5ca   : > { %s3721_s0 = spop %3720 }
 0x5cb   : > { %s2260_s18 = ssub.f32 %s3717_s26, %s3721_s0  ;;  %s2264_s30 = smul.f32 0.00048828125, %s3721_s0 }
 0x5cc   : > { %s3723_s27 = spop %3722  ;;  %s4794_s0 = sld [smem:[#allocation15_spill]] }
 0x5cd   : > { %s2267_s21 = smul.f32 0.00048828125, %s2260_s18  ;;  %s2261_s23 = ssub.f32 %s3719_s29, %s3723_s27  ;;  %v2286_v13 = vstv %s2264_s30 }
 0x5ce   : > { %s2271_s28 = smul.f32 %s2264_s30, %s2264_s30 }
 0x5cf   : > { %s2280_s17 = smul.f32 %s2267_s21, %s2267_s21  ;;  %v2287_v14 = vstv %s2267_s21  ;;  %s2779_s21 = sshll.u32 %s4800_s22, 5 }
 0x5d0   : > { %v2288_v15 = vsel %vm4474_vm2, %v2286_v13, %v2287_v14  ;;  %s2270_s19 = smul.f32 0.00048828125, %s3723_s27  ;;  %s4795_s27 = sld [smem:[#allocation16_spill]]  ;;  %v2356_v13 = vld [vmem:[#allocation7 + $0x58] sm:$0xff]  ;;  %v2357_v14 = vld [vmem:[#allocation7 + $0x60] sm:$0xff] }
 0x5d1   : > { %s2279_s20 = smul.f32 0.00048828125, %s2261_s23  ;;  %v2293_v31 = vsub.f32 %v4682_v41, %v2288_v15  ;;  %v2292_v42 = vsub.f32 %v4684_v43, %v2288_v15  ;;  %v2294_v25 = vsub.f32 %v4698_v52, %v2288_v15  ;;  %v2295_v26 = vsub.f32 %v4696_v50, %v2288_v15  ;;  %v2358_v15 = vld [vmem:[#allocation7 + $0x68] sm:$0xff] }
 0x5d2   : > { %s2272_s25 = ssub.f32 %s2270_s19, %s2271_s28  ;;  %v2296_v20 = vld [vmem:[%s4794_s0] sm:$0x1] }
 0x5d3   : > { %s2281_s11 = ssub.f32 %s2279_s20, %s2280_s17  ;;  %s4796_s17 = sld [smem:[#allocation17_spill]] }
 0x5d4   : > { %s2273_s12 = sadd.f32 1e-05, %s2272_s25  ;;  %s4797_s25 = sld [smem:[#allocation18_spill]] }
 0x5d5   : > { %s2282_s15 = sadd.f32 1e-05, %s2281_s11 }
 0x5d6   : > { %v2274_v16 = vstv %s2273_s12  ;;  %v2769_v27 = vld [vmem:[%s4795_s27] ss:$0 sm:$0xff] }
 0x5d7   : > { %3802 = vrsqrt.f32 %v2274_v16  ;;  %v2283_v17 = vstv %s2282_s15  ;;  %v3672_v16 = vpack.c.bf16 %v2358_v15, %v2357_v14 }
 0x5d8   : > { %3804 = vrsqrt.f32 %v2283_v17  ;;  %v2359_v17 = vld [vmem:[#allocation7 + $0x70] sm:$0xff] }
 0x5da   : > { %s600_s11 = scalar_lea.vmem %s4797_s25, %s2779_s21 }
 0x5e1   : > { %v3803_v18 = vpop.eup %3802 }
 0x5e2   : > { %v3805_v19 = vpop.eup %3804  ;;  %3724 = vpush %v3803_v18 }
 0x5e3   : > { %3726 = vpush %v3805_v19  ;;  %v2774_v19 = vld [vmem:[%s4796_s17] ss:$0 sm:$0xff] }
 0x613   : > { %s3725_s16 = spop %3724 }
 0x614   : > { %s3727_s24 = spop %3726  ;;  %v2289_v22 = vstv %s3725_s16 }
 0x615   : > { %v2290_v23 = vstv %s3727_s24 }
 0x616   : > { %v2291_v48 = vsel %vm4474_vm2, %v2289_v22, %v2290_v23 }
 0x617   : > { %v2297_v24 = vmul.f32 %v2296_v20, %v2291_v48 }
 0x619   : > { %v2301_v30 = vrot.slane %v2297_v24, %v4342_v59 }
 0x61b   : > { %v2303_v28 = vmul.f32 %v2301_v30, %v2293_v31  ;;  %v2302_v29 = vmul.f32 %v2301_v30, %v2292_v42  ;;  %v2304_v32 = vmul.f32 %v2301_v30, %v2294_v25  ;;  %v2305_v21 = vmul.f32 %v2301_v30, %v2295_v26 }
 0x61d   : > { %v2313_v33 = vadd.f32 %v2769_v27, %v2302_v29  ;;  %v2314_v34 = vadd.f32 %v2769_v27, %v2303_v28  ;;  %v2315_v35 = vadd.f32 %v2769_v27, %v2304_v32  ;;  %v2316_v41 = vadd.f32 %v2769_v27, %v2305_v21 }
 0x61f   : > { %v2770_v36 = vmul.f32 -1.442695, %v2313_v33  ;;  %v2771_v59 = vmul.f32 -1.442695, %v2314_v34  ;;  %v2772_v37 = vmul.f32 -1.442695, %v2315_v35 }
 0x620   : > { %v2773_v43 = vmul.f32 -1.442695, %v2316_v41 }
 0x621   : > { %3806 = vpow2.f32 %v2770_v36 }
 0x622   : > { %3808 = vpow2.f32 %v2771_v59 }
 0x623   : > { %3810 = vpow2.f32 %v2772_v37 }
 0x624   : > { %3812 = vpow2.f32 %v2773_v43 }
 0x62b   : > { %v3807_v50 = vpop.eup %3806 }
 0x62c   : > { %v3809_v52 = vpop.eup %3808  ;;  %v2329_v62 = vadd.f32 1.0, %v3807_v50 }
 0x62d   : > { %v3811_v44 = vpop.eup %3810  ;;  %v2330_v45 = vadd.f32 1.0, %v3809_v52 }
 0x62e   : > { %v3813_v46 = vpop.eup %3812  ;;  %3814 = vrcp.f32 %v2329_v62  ;;  %v2331_v47 = vadd.f32 1.0, %v3811_v44 }
 0x62f   : > { %3816 = vrcp.f32 %v2330_v45  ;;  %v2332_v49 = vadd.f32 1.0, %v3813_v46 }
 0x630   : > { %3818 = vrcp.f32 %v2331_v47 }
 0x631   : > { %3820 = vrcp.f32 %v2332_v49 }
 0x638   : > { %v3815_v54 = vpop.eup %3814 }
 0x639   : > { %v3817_v55 = vpop.eup %3816  ;;  %v2341_v39 = vmul.f32 %v3815_v54, %v2313_v33 }
 0x63a   : > { %v3819_v57 = vpop.eup %3818  ;;  %v2342_v58 = vmul.f32 %v3817_v55, %v2314_v34 }
 0x63b   : > { %v3821_v61 = vpop.eup %3820  ;;  %3316 = vmatprep.mubr.f32.mxu0 %v2341_v39  ;;  %v2343_v63 = vmul.f32 %v3819_v57, %v2315_v35 }
 0x63c   : > { %3317 = vmatmul.mubr.f32.vlgmr.msra.gmra.mrb[6].mxu0 %v2342_v58  ;;  %v2344_v4 = vmul.f32 %v3821_v61, %v2316_v41 }
 0x63d   : > { %3651 = vmatpush3.bf16.msra.mxu0 %v4722_v12  ;;  %3319 = vmatprep.mubr.f32.mxu0 %v2343_v63  ;;  %v3668_v12 = vpack.c.bf16 %v2356_v13, %v2355_v11 }
 0x63e   : > { %3653 = vmatprep.subr.bf16.mxu0 %v3652_v60 }
 0x640   : > { %3320 = vmatmul.mubr.f32.gmra.mrb[8].mxu0 %v2344_v4 }
 0x641   : > { %3655 = vmatpush3.bf16.msra.mxu0 %v3652_v60  ;;  %3354 = vmatprep.mubr.f32.mxu0 %v4415_v38  ;;  %v2360_v38 = vld [vmem:[#allocation7 + $0x78] sm:$0xff] }
 0x642   : > { %3657 = vmatprep.subr.bf16.mxu0 %v3656_v5  ;;  %v3676_v18 = vpack.c.bf16 %v2360_v38, %v2359_v17 }
 0x645   : > { %3659 = vmatpush3.bf16.msra.mxu0 %v3656_v5 }
 0x646   : > { %3661 = vmatprep.subr.bf16.mxu0 %v3660_v3 }
 0x649   : > { %3663 = vmatpush3.bf16.msra.mxu0 %v3660_v3 }
 0x64a   : > { %3665 = vmatprep.subr.bf16.mxu0 %v3664_v10 }
 0x64d   : > { %3667 = vmatpush3.bf16.msra.mxu0 %v3664_v10 }
 0x64e   : > { %3669 = vmatprep.subr.bf16.mxu0 %v3668_v12 }
 0x651   : > { %3671 = vmatpush3.bf16.msra.mxu0 %v3668_v12 }
 0x652   : > { %3673 = vmatprep.subr.bf16.mxu0 %v3672_v16 }
 0x655   : > { %3675 = vmatpush3.bf16.msra.mxu0 %v3672_v16 }
 0x656   : > { %3677 = vmatprep.subr.bf16.mxu0 %v3676_v18 }
 0x659   : > { %3679 = vmatpush3.bf16.msra.mxu0 %v3676_v18 }
 0x65c   : > { %3355 = vmatmul.mubr.f32.vlgmr.msra.gmra.mrb[6].mxu0 %v4417_v40 }
 0x65d   : > { %3357 = vmatprep.mubr.f32.mxu0 %v4380_v56 }
 0x660   : > { %3358 = vmatmul.mubr.f32.gmra.mrb[8].mxu0 %v4387_v0 }
 0x72f   : > { %v3356_v20 = vpop.f32.mrb[6].mxu0 }
 0x730   : > { %v2555_v22 = vadd.f32 %v3356_v20, %v2774_v19  ;;  %v2528_v23 = vpop.f32.mrb[7].mxu0 }
 0x731   : > { %v2554_v48 = vadd.f32 %v2774_v19, %v2528_v23 }
 0x732   : > { %2559 = vst [vmem:[%s600_s11 + $0x8] sm:$0xff] %v2555_v22 }
 0x733   : > { %2558 = vst [vmem:[%s600_s11] sm:$0xff] %v2554_v48  ;;  %v3359_v40 = vpop.f32.mrb[8].mxu0 }
 0x734   : > { %v2557_v24 = vadd.f32 %v3359_v40, %v2774_v19  ;;  %v2538_v56 = vpop.f32.mrb[9].mxu0 }
 0x735   : > { %v2556_v31 = vadd.f32 %v2774_v19, %v2538_v56 }
 0x736   : > { %2561 = vst [vmem:[%s600_s11 + $0x18] sm:$0xff] %v2557_v24 }
 0x737   : > { %2560 = vst [vmem:[%s600_s11 + $0x10] sm:$0xff] %v2556_v31 }
 0x738 PF: > { %s4798_s22 = sld [smem:[#allocation13_spill]] }
 0x73e   : > { %s29_s21 = sadd.s32 1, %s4798_s22  }
 0x73f   : > { %p26_p6 = scmp.ge.s32.totalorder %s29_s21, 4  }
 0x741   :  { %28 = sbr.rel (!%p26_p6) target bundleno = 9 (0x9), region = 140 }
 0x748   :  { %2583 = vsyncpa [#allocation4], 1 }
 0x749   :  { %2585 = vsyncpa [#allocation4 + $0x1], 1 }
 0x74a   :  { %2586 = vsyncpa [#allocation6], 1 }
 0x74b   :  { %2587 = vsyncpa [#allocation9], 1 }

</bundles_post_ra>
